<compile_context>
chip_gen: v7x
topology: tpu7x:2x2x1
jax: 0.10.0
libtpu: 0.0.40
codegen_flags: <defaults>
</compile_context>

<pallas_src>
import jax
import jax.numpy as jnp
from jax.experimental import pallas as pl
from jax.experimental.pallas import tpu as pltpu


def _round_up(n, m):
    return ((n + m - 1) // m) * m


# Kernel-side gate order: [i, f, o, g]  (PyTorch order is [i, f, g, o]).
_GATE_PERM = (0, 1, 3, 2)   # kernel slot -> PyTorch gate index


def lstm_kernel(xg_ref, whh_ref, wfc_ref, bfc_ref, out_ref):
    """One invocation computes the whole LSTM recurrence + final FC.

    xg_ref : (T, B, 4*Hp) f32   precomputed x@W_ih^T + (b_ih+b_hh), gates [i,f,o,g], padded
    whh_ref: (Hp, 4*Hp)  bf16   recurrent weights, same gate layout, zero-padded rows
    wfc_ref: (Hp, O)     bf16   final FC weights, zero-padded rows
    bfc_ref: (1, O)      f32
    out_ref: (B, O)      f32
    """
    T, B, G = xg_ref.shape
    Hp = G // 4

    def sigmoid_via_tanh(z):
        # sigmoid(x) == 0.5 * tanh(0.5 * x) + 0.5  : one EUP tanh + one VPU FMA.
        return 0.5 * jnp.tanh(0.5 * z) + 0.5

    def step(t, carry):
        h, c = carry
        # Recurrent projection: bf16 x bf16 -> f32 accumulate on the MXU.
        gates = xg_ref[t] + jnp.dot(h.astype(jnp.bfloat16), whh_ref[...],
                                    preferred_element_type=jnp.float32)
        # [i | f | o] share one contiguous sigmoid, [g] gets the lone tanh.
        sig = sigmoid_via_tanh(gates[:, 0:3 * Hp])
        g_g = jnp.tanh(gates[:, 3 * Hp:4 * Hp])
        i_g = sig[:, 0 * Hp:1 * Hp]
        f_g = sig[:, 1 * Hp:2 * Hp]
        o_g = sig[:, 2 * Hp:3 * Hp]
        c_new = f_g * c + i_g * g_g
        h_new = o_g * jnp.tanh(c_new)
        return h_new, c_new

    h0 = jnp.zeros((B, Hp), jnp.float32)
    c0 = jnp.zeros((B, Hp), jnp.float32)
    # Fully-unrolled in-kernel time loop (T=8 here); h/c live in vregs.
    h_T, _ = jax.lax.fori_loop(0, T, step, (h0, c0), unroll=True)

    out_ref[...] = (jnp.dot(h_T.astype(jnp.bfloat16), wfc_ref[...],
                            preferred_element_type=jnp.float32)
                    + bfc_ref[...])


def prepare_padded_params(params):
    """One-time: pad hidden dim to a 128-lane multiple, reorder gates to [i,f,o,g],
    cast MXU weight operands to bf16.  Do NOT call this per forward step."""
    H = params["w_hh_t"].shape[0]
    O = params["w_fc_t"].shape[1]
    Hp = _round_up(H, 128)
    G = 4 * Hp

    def pad_gate_cols(w):  # (rows, 4H) PyTorch-order -> (rows, 4Hp) kernel-order
        rows = w.shape[0]
        out = jnp.zeros((rows, G), jnp.float32)
        for slot, pt in enumerate(_GATE_PERM):
            out = out.at[:, slot * Hp: slot * Hp + H].set(w[:, pt * H:(pt + 1) * H])
        return out

    w_ih_p = pad_gate_cols(params["w_ih_t"])                              # (I, 4Hp) f32
    w_hh_p = jnp.zeros((Hp, G), jnp.float32).at[:H, :].set(
        pad_gate_cols(params["w_hh_t"])).astype(jnp.bfloat16)             # (Hp, 4Hp) bf16
    b_p = pad_gate_cols((params["b_ih"] + params["b_hh"])[None, :])       # (1, 4Hp) f32
    w_fc_p = jnp.zeros((Hp, O), jnp.float32).at[:H, :].set(
        params["w_fc_t"]).astype(jnp.bfloat16)                            # (Hp, O) bf16
    b_fc = params["b_fc"].reshape(1, O).astype(jnp.float32)
    return {"w_ih_p": w_ih_p, "w_hh_p": w_hh_p, "b_p": b_p,
            "w_fc_p": w_fc_p, "b_fc": b_fc}


@jax.jit
def lstm_model_forward(x, padded):
    """x: (batch, seq, input_size) f32; padded: output of prepare_padded_params.
    Returns (batch, output_size) f32."""
    B, T, I = x.shape
    Hp, G = padded["w_hh_p"].shape
    O = padded["w_fc_p"].shape[1]

    # Input projection hoisted out of the recurrence (I=1 -> broadcast multiply).
    x_tm = jnp.transpose(x, (1, 0, 2))                                    # (T, B, I)
    xg = jnp.einsum("tbi,ig->tbg", x_tm, padded["w_ih_p"]) + padded["b_p"]  # (T, B, 4Hp)

    return pl.pallas_call(
        lstm_kernel,
        out_shape=jax.ShapeDtypeStruct((B, O), jnp.float32),
        grid_spec=pltpu.PrefetchScalarGridSpec(
            num_scalar_prefetch=0,
            grid=(1,),   # single step: all operands are resident for the whole kernel
            in_specs=[
                pl.BlockSpec((T, B, G), lambda i: (0, 0, 0)),   # xg slab (f32)
                pl.BlockSpec((Hp, G), lambda i: (0, 0)),        # W_hh^T (bf16, padded)
                pl.BlockSpec((Hp, O), lambda i: (0, 0)),        # W_fc^T (bf16, padded)
                pl.BlockSpec((1, O), lambda i: (0, 0)),         # b_fc
            ],
            out_specs=pl.BlockSpec((B, O), lambda i: (0, 0)),
        ),
        compiler_params=pltpu.CompilerParams(
            dimension_semantics=("arbitrary",)),
    )(xg, padded["w_hh_p"], padded["w_fc_p"], padded["b_fc"])


def make_params(key, input_size=1, hidden_size=50, output_size=14):
    """Deterministic init mirroring PyTorch shapes (uniform +-1/sqrt(H)), gate order [i,f,g,o]."""
    ks = jax.random.split(key, 6)
    s = 1.0 / jnp.sqrt(hidden_size)
    u = lambda k, shape: jax.random.uniform(k, shape, jnp.float32, -s, s)
    return {
        # stored already transposed for right-multiplication
        "w_ih_t": u(ks[0], (input_size, 4 * hidden_size)),   # = W_ih^T
        "w_hh_t": u(ks[1], (hidden_size, 4 * hidden_size)),  # = W_hh^T
        "b_ih":   u(ks[2], (4 * hidden_size,)),
        "b_hh":   u(ks[3], (4 * hidden_size,)),
        "w_fc_t": u(ks[4], (hidden_size, output_size)),      # = W_fc^T
        "b_fc":   u(ks[5], (output_size,)),
    }


def reference_forward(x, params):
    """Pure-JAX f32 reference reproducing torch.nn.LSTM(batch_first=True) + Linear."""
    B, T, I = x.shape
    H = params["w_hh_t"].shape[0]
    h = jnp.zeros((B, H), jnp.float32)
    c = jnp.zeros((B, H), jnp.float32)
    b = params["b_ih"] + params["b_hh"]
    for t in range(T):
        g = x[:, t, :] @ params["w_ih_t"] + h @ params["w_hh_t"] + b
        i_g = jax.nn.sigmoid(g[:, 0 * H:1 * H])
        f_g = jax.nn.sigmoid(g[:, 1 * H:2 * H])
        g_g = jnp.tanh(g[:, 2 * H:3 * H])
        o_g = jax.nn.sigmoid(g[:, 3 * H:4 * H])
        c = f_g * c + i_g * g_g
        h = o_g * jnp.tanh(c)
    return h @ params["w_fc_t"] + params["b_fc"][None, :]


if __name__ == "__main__":
    key = jax.random.PRNGKey(0)
    k_x, k_p = jax.random.split(key)

    batch, seq, input_size = 2, 8, 1
    hidden_size, output_size = 50, 14

    x = jax.random.normal(k_x, (batch, seq, input_size), jnp.float32)
    params = make_params(k_p, input_size, hidden_size, output_size)

    # One-time weight preparation (padding / gate reorder / bf16 cast) — cached.
    padded = prepare_padded_params(params)
    padded = jax.tree_util.tree_map(jax.block_until_ready, padded)

    out = lstm_model_forward(x, padded)
    out = jax.block_until_ready(out)

    ref = reference_forward(x, params)
    assert out.shape == (batch, output_size)
    assert bool(jnp.all(jnp.isfinite(out)))
    # bf16 MXU operands -> tolerance loosened vs the pure-f32 reference.
    assert jnp.allclose(out, ref, atol=2e-2, rtol=2e-2), "mismatch vs reference"

    print("KERNEL_OK")
</pallas_src>

<mosaic_0001>
module attributes {stable_mosaic.version = 11 : i64} {
  func.func @lstm_kernel(%arg0: i32, %arg1: memref<8x2x512xf32, #tpu.memory_space<vmem>>, %arg2: memref<128x512xbf16, #tpu.memory_space<vmem>>, %arg3: memref<128x14xbf16, #tpu.memory_space<vmem>>, %arg4: memref<1x14xf32, #tpu.memory_space<vmem>>, %arg5: memref<2x14xf32, #tpu.memory_space<vmem>>) attributes {dimension_semantics = [#tpu.dimension_semantics<arbitrary>], iteration_bounds = array<i64: 1>, scalar_prefetch = 0 : i64, scratch_operands = 0 : i64, tpu.core_type = #tpu.core_type<tc>, window_params = [{pipeline_mode = #tpu.pipeline_mode<synchronous>, transform_indices = @transform_0, window_bounds = array<i64: 8, 2, 512>}, {pipeline_mode = #tpu.pipeline_mode<synchronous>, transform_indices = @transform_1, window_bounds = array<i64: 128, 512>}, {pipeline_mode = #tpu.pipeline_mode<synchronous>, transform_indices = @transform_2, window_bounds = array<i64: 128, 14>}, {pipeline_mode = #tpu.pipeline_mode<synchronous>, transform_indices = @transform_3, window_bounds = array<i64: 1, 14>}, {pipeline_mode = #tpu.pipeline_mode<synchronous>, transform_indices = @transform_4, window_bounds = array<i64: 2, 14>}]} {
    %cst = arith.constant 0.000000e+00 : f32
    %0 = vector.broadcast %cst : f32 to vector<2x128xf32>
    %cst_0 = arith.constant 0.000000e+00 : f32
    %1 = vector.broadcast %cst_0 : f32 to vector<2x128xf32>
    %c0_i32 = arith.constant 0 : i32
    %2 = arith.index_cast %c0_i32 : i32 to index
    %c0 = arith.constant 0 : index
    %c0_1 = arith.constant 0 : index
    %3 = vector.load %arg1[%2, %c0, %c0_1] : memref<8x2x512xf32, #tpu.memory_space<vmem>>, vector<1x2x512xf32>
    %4 = vector.shape_cast %3 : vector<1x2x512xf32> to vector<2x512xf32>
    %5 = arith.truncf %0 : vector<2x128xf32> to vector<2x128xbf16>
    %c0_2 = arith.constant 0 : index
    %c0_3 = arith.constant 0 : index
    %6 = vector.load %arg2[%c0_2, %c0_3] : memref<128x512xbf16, #tpu.memory_space<vmem>>, vector<128x512xbf16>
    %cst_4 = arith.constant dense<0.000000e+00> : vector<2x512xf32>
    %7 = tpu.matmul %5, %6, %cst_4 {dimension_numbers = #tpu.dot_dimension_numbers<[1], [0], [0], [1], [0, 0, 1, 1], [], []>} : vector<2x128xbf16>, vector<128x512xbf16>, vector<2x512xf32> -> vector<2x512xf32>
    %8 = arith.addf %4, %7 : vector<2x512xf32>
    %9 = vector.extract_strided_slice %8 {offsets = [0, 0], sizes = [2, 384], strides = [1, 1]} : vector<2x512xf32> to vector<2x384xf32>
    %cst_5 = arith.constant 5.000000e-01 : f32
    %10 = vector.broadcast %cst_5 : f32 to vector<2x384xf32>
    %11 = arith.mulf %10, %9 : vector<2x384xf32>
    %12 = math.tanh %11 : vector<2x384xf32>
    %cst_6 = arith.constant 5.000000e-01 : f32
    %13 = vector.broadcast %cst_6 : f32 to vector<2x384xf32>
    %14 = arith.mulf %13, %12 : vector<2x384xf32>
    %cst_7 = arith.constant 5.000000e-01 : f32
    %15 = vector.broadcast %cst_7 : f32 to vector<2x384xf32>
    %16 = arith.addf %14, %15 : vector<2x384xf32>
    %17 = vector.extract_strided_slice %8 {offsets = [0, 384], sizes = [2, 128], strides = [1, 1]} : vector<2x512xf32> to vector<2x128xf32>
    %18 = math.tanh %17 : vector<2x128xf32>
    %19 = vector.extract_strided_slice %16 {offsets = [0, 0], sizes = [2, 128], strides = [1, 1]} : vector<2x384xf32> to vector<2x128xf32>
    %20 = vector.extract_strided_slice %16 {offsets = [0, 128], sizes = [2, 128], strides = [1, 1]} : vector<2x384xf32> to vector<2x128xf32>
    %21 = vector.extract_strided_slice %16 {offsets = [0, 256], sizes = [2, 128], strides = [1, 1]} : vector<2x384xf32> to vector<2x128xf32>
    %22 = arith.mulf %20, %1 : vector<2x128xf32>
    %23 = arith.mulf %19, %18 : vector<2x128xf32>
    %24 = arith.addf %22, %23 : vector<2x128xf32>
    %25 = math.tanh %24 : vector<2x128xf32>
    %26 = arith.mulf %21, %25 : vector<2x128xf32>
    %c1_i32 = arith.constant 1 : i32
    %27 = arith.index_cast %c1_i32 : i32 to index
    %c0_8 = arith.constant 0 : index
    %c0_9 = arith.constant 0 : index
    %28 = vector.load %arg1[%27, %c0_8, %c0_9] : memref<8x2x512xf32, #tpu.memory_space<vmem>>, vector<1x2x512xf32>
    %29 = vector.shape_cast %28 : vector<1x2x512xf32> to vector<2x512xf32>
    %30 = arith.truncf %26 : vector<2x128xf32> to vector<2x128xbf16>
    %c0_10 = arith.constant 0 : index
    %c0_11 = arith.constant 0 : index
    %31 = vector.load %arg2[%c0_10, %c0_11] : memref<128x512xbf16, #tpu.memory_space<vmem>>, vector<128x512xbf16>
    %cst_12 = arith.constant dense<0.000000e+00> : vector<2x512xf32>
    %32 = tpu.matmul %30, %31, %cst_12 {dimension_numbers = #tpu.dot_dimension_numbers<[1], [0], [0], [1], [0, 0, 1, 1], [], []>} : vector<2x128xbf16>, vector<128x512xbf16>, vector<2x512xf32> -> vector<2x512xf32>
    %33 = arith.addf %29, %32 : vector<2x512xf32>
    %34 = vector.extract_strided_slice %33 {offsets = [0, 0], sizes = [2, 384], strides = [1, 1]} : vector<2x512xf32> to vector<2x384xf32>
    %cst_13 = arith.constant 5.000000e-01 : f32
    %35 = vector.broadcast %cst_13 : f32 to vector<2x384xf32>
    %36 = arith.mulf %35, %34 : vector<2x384xf32>
    %37 = math.tanh %36 : vector<2x384xf32>
    %cst_14 = arith.constant 5.000000e-01 : f32
    %38 = vector.broadcast %cst_14 : f32 to vector<2x384xf32>
    %39 = arith.mulf %38, %37 : vector<2x384xf32>
    %cst_15 = arith.constant 5.000000e-01 : f32
    %40 = vector.broadcast %cst_15 : f32 to vector<2x384xf32>
    %41 = arith.addf %39, %40 : vector<2x384xf32>
    %42 = vector.extract_strided_slice %33 {offsets = [0, 384], sizes = [2, 128], strides = [1, 1]} : vector<2x512xf32> to vector<2x128xf32>
    %43 = math.tanh %42 : vector<2x128xf32>
    %44 = vector.extract_strided_slice %41 {offsets = [0, 0], sizes = [2, 128], strides = [1, 1]} : vector<2x384xf32> to vector<2x128xf32>
    %45 = vector.extract_strided_slice %41 {offsets = [0, 128], sizes = [2, 128], strides = [1, 1]} : vector<2x384xf32> to vector<2x128xf32>
    %46 = vector.extract_strided_slice %41 {offsets = [0, 256], sizes = [2, 128], strides = [1, 1]} : vector<2x384xf32> to vector<2x128xf32>
    %47 = arith.mulf %45, %24 : vector<2x128xf32>
    %48 = arith.mulf %44, %43 : vector<2x128xf32>
    %49 = arith.addf %47, %48 : vector<2x128xf32>
    %50 = math.tanh %49 : vector<2x128xf32>
    %51 = arith.mulf %46, %50 : vector<2x128xf32>
    %c2_i32 = arith.constant 2 : i32
    %52 = arith.index_cast %c2_i32 : i32 to index
    %c0_16 = arith.constant 0 : index
    %c0_17 = arith.constant 0 : index
    %53 = vector.load %arg1[%52, %c0_16, %c0_17] : memref<8x2x512xf32, #tpu.memory_space<vmem>>, vector<1x2x512xf32>
    %54 = vector.shape_cast %53 : vector<1x2x512xf32> to vector<2x512xf32>
    %55 = arith.truncf %51 : vector<2x128xf32> to vector<2x128xbf16>
    %c0_18 = arith.constant 0 : index
    %c0_19 = arith.constant 0 : index
    %56 = vector.load %arg2[%c0_18, %c0_19] : memref<128x512xbf16, #tpu.memory_space<vmem>>, vector<128x512xbf16>
    %cst_20 = arith.constant dense<0.000000e+00> : vector<2x512xf32>
    %57 = tpu.matmul %55, %56, %cst_20 {dimension_numbers = #tpu.dot_dimension_numbers<[1], [0], [0], [1], [0, 0, 1, 1], [], []>} : vector<2x128xbf16>, vector<128x512xbf16>, vector<2x512xf32> -> vector<2x512xf32>
    %58 = arith.addf %54, %57 : vector<2x512xf32>
    %59 = vector.extract_strided_slice %58 {offsets = [0, 0], sizes = [2, 384], strides = [1, 1]} : vector<2x512xf32> to vector<2x384xf32>
    %cst_21 = arith.constant 5.000000e-01 : f32
    %60 = vector.broadcast %cst_21 : f32 to vector<2x384xf32>
    %61 = arith.mulf %60, %59 : vector<2x384xf32>
    %62 = math.tanh %61 : vector<2x384xf32>
    %cst_22 = arith.constant 5.000000e-01 : f32
    %63 = vector.broadcast %cst_22 : f32 to vector<2x384xf32>
    %64 = arith.mulf %63, %62 : vector<2x384xf32>
    %cst_23 = arith.constant 5.000000e-01 : f32
    %65 = vector.broadcast %cst_23 : f32 to vector<2x384xf32>
    %66 = arith.addf %64, %65 : vector<2x384xf32>
    %67 = vector.extract_strided_slice %58 {offsets = [0, 384], sizes = [2, 128], strides = [1, 1]} : vector<2x512xf32> to vector<2x128xf32>
    %68 = math.tanh %67 : vector<2x128xf32>
    %69 = vector.extract_strided_slice %66 {offsets = [0, 0], sizes = [2, 128], strides = [1, 1]} : vector<2x384xf32> to vector<2x128xf32>
    %70 = vector.extract_strided_slice %66 {offsets = [0, 128], sizes = [2, 128], strides = [1, 1]} : vector<2x384xf32> to vector<2x128xf32>
    %71 = vector.extract_strided_slice %66 {offsets = [0, 256], sizes = [2, 128], strides = [1, 1]} : vector<2x384xf32> to vector<2x128xf32>
    %72 = arith.mulf %70, %49 : vector<2x128xf32>
    %73 = arith.mulf %69, %68 : vector<2x128xf32>
    %74 = arith.addf %72, %73 : vector<2x128xf32>
    %75 = math.tanh %74 : vector<2x128xf32>
    %76 = arith.mulf %71, %75 : vector<2x128xf32>
    %c3_i32 = arith.constant 3 : i32
    %77 = arith.index_cast %c3_i32 : i32 to index
    %c0_24 = arith.constant 0 : index
    %c0_25 = arith.constant 0 : index
    %78 = vector.load %arg1[%77, %c0_24, %c0_25] : memref<8x2x512xf32, #tpu.memory_space<vmem>>, vector<1x2x512xf32>
    %79 = vector.shape_cast %78 : vector<1x2x512xf32> to vector<2x512xf32>
    %80 = arith.truncf %76 : vector<2x128xf32> to vector<2x128xbf16>
    %c0_26 = arith.constant 0 : index
    %c0_27 = arith.constant 0 : index
    %81 = vector.load %arg2[%c0_26, %c0_27] : memref<128x512xbf16, #tpu.memory_space<vmem>>, vector<128x512xbf16>
    %cst_28 = arith.constant dense<0.000000e+00> : vector<2x512xf32>
    %82 = tpu.matmul %80, %81, %cst_28 {dimension_numbers = #tpu.dot_dimension_numbers<[1], [0], [0], [1], [0, 0, 1, 1], [], []>} : vector<2x128xbf16>, vector<128x512xbf16>, vector<2x512xf32> -> vector<2x512xf32>
    %83 = arith.addf %79, %82 : vector<2x512xf32>
    %84 = vector.extract_strided_slice %83 {offsets = [0, 0], sizes = [2, 384], strides = [1, 1]} : vector<2x512xf32> to vector<2x384xf32>
    %cst_29 = arith.constant 5.000000e-01 : f32
    %85 = vector.broadcast %cst_29 : f32 to vector<2x384xf32>
    %86 = arith.mulf %85, %84 : vector<2x384xf32>
    %87 = math.tanh %86 : vector<2x384xf32>
    %cst_30 = arith.constant 5.000000e-01 : f32
    %88 = vector.broadcast %cst_30 : f32 to vector<2x384xf32>
    %89 = arith.mulf %88, %87 : vector<2x384xf32>
    %cst_31 = arith.constant 5.000000e-01 : f32
    %90 = vector.broadcast %cst_31 : f32 to vector<2x384xf32>
    %91 = arith.addf %89, %90 : vector<2x384xf32>
    %92 = vector.extract_strided_slice %83 {offsets = [0, 384], sizes = [2, 128], strides = [1, 1]} : vector<2x512xf32> to vector<2x128xf32>
    %93 = math.tanh %92 : vector<2x128xf32>
    %94 = vector.extract_strided_slice %91 {offsets = [0, 0], sizes = [2, 128], strides = [1, 1]} : vector<2x384xf32> to vector<2x128xf32>
    %95 = vector.extract_strided_slice %91 {offsets = [0, 128], sizes = [2, 128], strides = [1, 1]} : vector<2x384xf32> to vector<2x128xf32>
    %96 = vector.extract_strided_slice %91 {offsets = [0, 256], sizes = [2, 128], strides = [1, 1]} : vector<2x384xf32> to vector<2x128xf32>
    %97 = arith.mulf %95, %74 : vector<2x128xf32>
    %98 = arith.mulf %94, %93 : vector<2x128xf32>
    %99 = arith.addf %97, %98 : vector<2x128xf32>
    %100 = math.tanh %99 : vector<2x128xf32>
    %101 = arith.mulf %96, %100 : vector<2x128xf32>
    %c4_i32 = arith.constant 4 : i32
    %102 = arith.index_cast %c4_i32 : i32 to index
    %c0_32 = arith.constant 0 : index
    %c0_33 = arith.constant 0 : index
    %103 = vector.load %arg1[%102, %c0_32, %c0_33] : memref<8x2x512xf32, #tpu.memory_space<vmem>>, vector<1x2x512xf32>
    %104 = vector.shape_cast %103 : vector<1x2x512xf32> to vector<2x512xf32>
    %105 = arith.truncf %101 : vector<2x128xf32> to vector<2x128xbf16>
    %c0_34 = arith.constant 0 : index
    %c0_35 = arith.constant 0 : index
    %106 = vector.load %arg2[%c0_34, %c0_35] : memref<128x512xbf16, #tpu.memory_space<vmem>>, vector<128x512xbf16>
    %cst_36 = arith.constant dense<0.000000e+00> : vector<2x512xf32>
    %107 = tpu.matmul %105, %106, %cst_36 {dimension_numbers = #tpu.dot_dimension_numbers<[1], [0], [0], [1], [0, 0, 1, 1], [], []>} : vector<2x128xbf16>, vector<128x512xbf16>, vector<2x512xf32> -> vector<2x512xf32>
    %108 = arith.addf %104, %107 : vector<2x512xf32>
    %109 = vector.extract_strided_slice %108 {offsets = [0, 0], sizes = [2, 384], strides = [1, 1]} : vector<2x512xf32> to vector<2x384xf32>
    %cst_37 = arith.constant 5.000000e-01 : f32
    %110 = vector.broadcast %cst_37 : f32 to vector<2x384xf32>
    %111 = arith.mulf %110, %109 : vector<2x384xf32>
    %112 = math.tanh %111 : vector<2x384xf32>
    %cst_38 = arith.constant 5.000000e-01 : f32
    %113 = vector.broadcast %cst_38 : f32 to vector<2x384xf32>
    %114 = arith.mulf %113, %112 : vector<2x384xf32>
    %cst_39 = arith.constant 5.000000e-01 : f32
    %115 = vector.broadcast %cst_39 : f32 to vector<2x384xf32>
    %116 = arith.addf %114, %115 : vector<2x384xf32>
    %117 = vector.extract_strided_slice %108 {offsets = [0, 384], sizes = [2, 128], strides = [1, 1]} : vector<2x512xf32> to vector<2x128xf32>
    %118 = math.tanh %117 : vector<2x128xf32>
    %119 = vector.extract_strided_slice %116 {offsets = [0, 0], sizes = [2, 128], strides = [1, 1]} : vector<2x384xf32> to vector<2x128xf32>
    %120 = vector.extract_strided_slice %116 {offsets = [0, 128], sizes = [2, 128], strides = [1, 1]} : vector<2x384xf32> to vector<2x128xf32>
    %121 = vector.extract_strided_slice %116 {offsets = [0, 256], sizes = [2, 128], strides = [1, 1]} : vector<2x384xf32> to vector<2x128xf32>
    %122 = arith.mulf %120, %99 : vector<2x128xf32>
    %123 = arith.mulf %119, %118 : vector<2x128xf32>
    %124 = arith.addf %122, %123 : vector<2x128xf32>
    %125 = math.tanh %124 : vector<2x128xf32>
    %126 = arith.mulf %121, %125 : vector<2x128xf32>
    %c5_i32 = arith.constant 5 : i32
    %127 = arith.index_cast %c5_i32 : i32 to index
    %c0_40 = arith.constant 0 : index
    %c0_41 = arith.constant 0 : index
    %128 = vector.load %arg1[%127, %c0_40, %c0_41] : memref<8x2x512xf32, #tpu.memory_space<vmem>>, vector<1x2x512xf32>
    %129 = vector.shape_cast %128 : vector<1x2x512xf32> to vector<2x512xf32>
    %130 = arith.truncf %126 : vector<2x128xf32> to vector<2x128xbf16>
    %c0_42 = arith.constant 0 : index
    %c0_43 = arith.constant 0 : index
    %131 = vector.load %arg2[%c0_42, %c0_43] : memref<128x512xbf16, #tpu.memory_space<vmem>>, vector<128x512xbf16>
    %cst_44 = arith.constant dense<0.000000e+00> : vector<2x512xf32>
    %132 = tpu.matmul %130, %131, %cst_44 {dimension_numbers = #tpu.dot_dimension_numbers<[1], [0], [0], [1], [0, 0, 1, 1], [], []>} : vector<2x128xbf16>, vector<128x512xbf16>, vector<2x512xf32> -> vector<2x512xf32>
    %133 = arith.addf %129, %132 : vector<2x512xf32>
    %134 = vector.extract_strided_slice %133 {offsets = [0, 0], sizes = [2, 384], strides = [1, 1]} : vector<2x512xf32> to vector<2x384xf32>
    %cst_45 = arith.constant 5.000000e-01 : f32
    %135 = vector.broadcast %cst_45 : f32 to vector<2x384xf32>
    %136 = arith.mulf %135, %134 : vector<2x384xf32>
    %137 = math.tanh %136 : vector<2x384xf32>
    %cst_46 = arith.constant 5.000000e-01 : f32
    %138 = vector.broadcast %cst_46 : f32 to vector<2x384xf32>
    %139 = arith.mulf %138, %137 : vector<2x384xf32>
    %cst_47 = arith.constant 5.000000e-01 : f32
    %140 = vector.broadcast %cst_47 : f32 to vector<2x384xf32>
    %141 = arith.addf %139, %140 : vector<2x384xf32>
    %142 = vector.extract_strided_slice %133 {offsets = [0, 384], sizes = [2, 128], strides = [1, 1]} : vector<2x512xf32> to vector<2x128xf32>
    %143 = math.tanh %142 : vector<2x128xf32>
    %144 = vector.extract_strided_slice %141 {offsets = [0, 0], sizes = [2, 128], strides = [1, 1]} : vector<2x384xf32> to vector<2x128xf32>
    %145 = vector.extract_strided_slice %141 {offsets = [0, 128], sizes = [2, 128], strides = [1, 1]} : vector<2x384xf32> to vector<2x128xf32>
    %146 = vector.extract_strided_slice %141 {offsets = [0, 256], sizes = [2, 128], strides = [1, 1]} : vector<2x384xf32> to vector<2x128xf32>
    %147 = arith.mulf %145, %124 : vector<2x128xf32>
    %148 = arith.mulf %144, %143 : vector<2x128xf32>
    %149 = arith.addf %147, %148 : vector<2x128xf32>
    %150 = math.tanh %149 : vector<2x128xf32>
    %151 = arith.mulf %146, %150 : vector<2x128xf32>
    %c6_i32 = arith.constant 6 : i32
    %152 = arith.index_cast %c6_i32 : i32 to index
    %c0_48 = arith.constant 0 : index
    %c0_49 = arith.constant 0 : index
    %153 = vector.load %arg1[%152, %c0_48, %c0_49] : memref<8x2x512xf32, #tpu.memory_space<vmem>>, vector<1x2x512xf32>
    %154 = vector.shape_cast %153 : vector<1x2x512xf32> to vector<2x512xf32>
    %155 = arith.truncf %151 : vector<2x128xf32> to vector<2x128xbf16>
    %c0_50 = arith.constant 0 : index
    %c0_51 = arith.constant 0 : index
    %156 = vector.load %arg2[%c0_50, %c0_51] : memref<128x512xbf16, #tpu.memory_space<vmem>>, vector<128x512xbf16>
    %cst_52 = arith.constant dense<0.000000e+00> : vector<2x512xf32>
    %157 = tpu.matmul %155, %156, %cst_52 {dimension_numbers = #tpu.dot_dimension_numbers<[1], [0], [0], [1], [0, 0, 1, 1], [], []>} : vector<2x128xbf16>, vector<128x512xbf16>, vector<2x512xf32> -> vector<2x512xf32>
    %158 = arith.addf %154, %157 : vector<2x512xf32>
    %159 = vector.extract_strided_slice %158 {offsets = [0, 0], sizes = [2, 384], strides = [1, 1]} : vector<2x512xf32> to vector<2x384xf32>
    %cst_53 = arith.constant 5.000000e-01 : f32
    %160 = vector.broadcast %cst_53 : f32 to vector<2x384xf32>
    %161 = arith.mulf %160, %159 : vector<2x384xf32>
    %162 = math.tanh %161 : vector<2x384xf32>
    %cst_54 = arith.constant 5.000000e-01 : f32
    %163 = vector.broadcast %cst_54 : f32 to vector<2x384xf32>
    %164 = arith.mulf %163, %162 : vector<2x384xf32>
    %cst_55 = arith.constant 5.000000e-01 : f32
    %165 = vector.broadcast %cst_55 : f32 to vector<2x384xf32>
    %166 = arith.addf %164, %165 : vector<2x384xf32>
    %167 = vector.extract_strided_slice %158 {offsets = [0, 384], sizes = [2, 128], strides = [1, 1]} : vector<2x512xf32> to vector<2x128xf32>
    %168 = math.tanh %167 : vector<2x128xf32>
    %169 = vector.extract_strided_slice %166 {offsets = [0, 0], sizes = [2, 128], strides = [1, 1]} : vector<2x384xf32> to vector<2x128xf32>
    %170 = vector.extract_strided_slice %166 {offsets = [0, 128], sizes = [2, 128], strides = [1, 1]} : vector<2x384xf32> to vector<2x128xf32>
    %171 = vector.extract_strided_slice %166 {offsets = [0, 256], sizes = [2, 128], strides = [1, 1]} : vector<2x384xf32> to vector<2x128xf32>
    %172 = arith.mulf %170, %149 : vector<2x128xf32>
    %173 = arith.mulf %169, %168 : vector<2x128xf32>
    %174 = arith.addf %172, %173 : vector<2x128xf32>
    %175 = math.tanh %174 : vector<2x128xf32>
    %176 = arith.mulf %171, %175 : vector<2x128xf32>
    %c7_i32 = arith.constant 7 : i32
    %177 = arith.index_cast %c7_i32 : i32 to index
    %c0_56 = arith.constant 0 : index
    %c0_57 = arith.constant 0 : index
    %178 = vector.load %arg1[%177, %c0_56, %c0_57] : memref<8x2x512xf32, #tpu.memory_space<vmem>>, vector<1x2x512xf32>
    %179 = vector.shape_cast %178 : vector<1x2x512xf32> to vector<2x512xf32>
    %180 = arith.truncf %176 : vector<2x128xf32> to vector<2x128xbf16>
    %c0_58 = arith.constant 0 : index
    %c0_59 = arith.constant 0 : index
    %181 = vector.load %arg2[%c0_58, %c0_59] : memref<128x512xbf16, #tpu.memory_space<vmem>>, vector<128x512xbf16>
    %cst_60 = arith.constant dense<0.000000e+00> : vector<2x512xf32>
    %182 = tpu.matmul %180, %181, %cst_60 {dimension_numbers = #tpu.dot_dimension_numbers<[1], [0], [0], [1], [0, 0, 1, 1], [], []>} : vector<2x128xbf16>, vector<128x512xbf16>, vector<2x512xf32> -> vector<2x512xf32>
    %183 = arith.addf %179, %182 : vector<2x512xf32>
    %184 = vector.extract_strided_slice %183 {offsets = [0, 0], sizes = [2, 384], strides = [1, 1]} : vector<2x512xf32> to vector<2x384xf32>
    %cst_61 = arith.constant 5.000000e-01 : f32
    %185 = vector.broadcast %cst_61 : f32 to vector<2x384xf32>
    %186 = arith.mulf %185, %184 : vector<2x384xf32>
    %187 = math.tanh %186 : vector<2x384xf32>
    %cst_62 = arith.constant 5.000000e-01 : f32
    %188 = vector.broadcast %cst_62 : f32 to vector<2x384xf32>
    %189 = arith.mulf %188, %187 : vector<2x384xf32>
    %cst_63 = arith.constant 5.000000e-01 : f32
    %190 = vector.broadcast %cst_63 : f32 to vector<2x384xf32>
    %191 = arith.addf %189, %190 : vector<2x384xf32>
    %192 = vector.extract_strided_slice %183 {offsets = [0, 384], sizes = [2, 128], strides = [1, 1]} : vector<2x512xf32> to vector<2x128xf32>
    %193 = math.tanh %192 : vector<2x128xf32>
    %194 = vector.extract_strided_slice %191 {offsets = [0, 0], sizes = [2, 128], strides = [1, 1]} : vector<2x384xf32> to vector<2x128xf32>
    %195 = vector.extract_strided_slice %191 {offsets = [0, 128], sizes = [2, 128], strides = [1, 1]} : vector<2x384xf32> to vector<2x128xf32>
    %196 = vector.extract_strided_slice %191 {offsets = [0, 256], sizes = [2, 128], strides = [1, 1]} : vector<2x384xf32> to vector<2x128xf32>
    %197 = arith.mulf %195, %174 : vector<2x128xf32>
    %198 = arith.mulf %194, %193 : vector<2x128xf32>
    %199 = arith.addf %197, %198 : vector<2x128xf32>
    %200 = math.tanh %199 : vector<2x128xf32>
    %201 = arith.mulf %196, %200 : vector<2x128xf32>
    %c8_i32 = arith.constant 8 : i32
    %202 = arith.truncf %201 : vector<2x128xf32> to vector<2x128xbf16>
    %c0_64 = arith.constant 0 : index
    %c0_65 = arith.constant 0 : index
    %203 = vector.load %arg3[%c0_64, %c0_65] : memref<128x14xbf16, #tpu.memory_space<vmem>>, vector<128x14xbf16>
    %cst_66 = arith.constant dense<0.000000e+00> : vector<2x14xf32>
    %204 = tpu.matmul %202, %203, %cst_66 {dimension_numbers = #tpu.dot_dimension_numbers<[1], [0], [0], [1], [0, 0, 1, 1], [], []>} : vector<2x128xbf16>, vector<128x14xbf16>, vector<2x14xf32> -> vector<2x14xf32>
    %c0_67 = arith.constant 0 : index
    %c0_68 = arith.constant 0 : index
    %205 = vector.load %arg4[%c0_67, %c0_68] : memref<1x14xf32, #tpu.memory_space<vmem>>, vector<1x14xf32>
    %206 = vector.broadcast %205 : vector<1x14xf32> to vector<2x14xf32>
    %207 = arith.addf %204, %206 : vector<2x14xf32>
    %c0_69 = arith.constant 0 : index
    %c0_70 = arith.constant 0 : index
    %208 = vector.load %arg5[%c0_69, %c0_70] : memref<2x14xf32, #tpu.memory_space<vmem>>, vector<2x14xf32>
    tpu.vector_store %arg5[%c0_69, %c0_70], %207 {strides = array<i32>} : memref<2x14xf32, #tpu.memory_space<vmem>>, vector<2x14xf32>,
    return
  }
  func.func @transform_0(%arg0: i32) -> (i32, i32, i32) {
    %c0_i32 = arith.constant 0 : i32
    %c0_i32_0 = arith.constant 0 : i32
    %c0_i32_1 = arith.constant 0 : i32
    %c0_i32_2 = arith.constant 0 : i32
    return %c0_i32, %c0_i32_0, %c0_i32_1 : i32, i32, i32
  }
  func.func @transform_1(%arg0: i32) -> (i32, i32) {
    %c0_i32 = arith.constant 0 : i32
    %c0_i32_0 = arith.constant 0 : i32
    %c0_i32_1 = arith.constant 0 : i32
    return %c0_i32, %c0_i32_0 : i32, i32
  }
  func.func @transform_2(%arg0: i32) -> (i32, i32) {
    %c0_i32 = arith.constant 0 : i32
    %c0_i32_0 = arith.constant 0 : i32
    %c0_i32_1 = arith.constant 0 : i32
    return %c0_i32, %c0_i32_0 : i32, i32
  }
  func.func @transform_3(%arg0: i32) -> (i32, i32) {
    %c0_i32 = arith.constant 0 : i32
    %c0_i32_0 = arith.constant 0 : i32
    %c0_i32_1 = arith.constant 0 : i32
    return %c0_i32, %c0_i32_0 : i32, i32
  }
  func.func @transform_4(%arg0: i32) -> (i32, i32) {
    %c0_i32 = arith.constant 0 : i32
    %c0_i32_0 = arith.constant 0 : i32
    %c0_i32_1 = arith.constant 0 : i32
    return %c0_i32, %c0_i32_0 : i32, i32
  }
}

</mosaic_0001>

<bundles_post_ra>
// kernel: lstm_model_forward.1
= control target key start
LH: loop header
LB: loop body
LE: loop exit
PB: predicated region body
PF: predicated region fallthrough
CT: control target
= control target key end

     0   :  { %9 = vsyncpa [#allocation3], 0  ;;  %s2085_s0 = inlined_call_operand.vmem [shape: f32[8,2,512], index: 0, kind: input, shape index: {}]   ;;  %s2086_s1 = inlined_call_operand.hbm [shape: bf16[128,512], index: 1, kind: input, shape index: {}]   ;;  %s2087_s2 = inlined_call_operand.vmem [shape: bf16[128,14], index: 2, kind: input, shape index: {}]   ;;  %s2088_s3 = inlined_call_operand.vmem [shape: f32[1,14], index: 3, kind: input, shape index: {}]   ;;  %s2089_s4 = inlined_call_operand.hbm [shape: f32[2,14], index: 4, kind: output, shape index: {}]  }
   0x1   :  { %10 = vsyncpa [#allocation4], 0  ;;  %s1607_s15 = smov [#allocation2]   ;;  %s1559_s19 = scalar_lea.hbm %s2086_s1, 4096 }
   0x2   :  { %s18_s16 = sshll.u32 %s1607_s15, 4  ;;  %p1560_p0 = scmp.ne.s32.totalorder %s2086_s1, %s1559_s19  ;;  %s19_s16 = int_to_ptr.vmem [resolvable:$true] %s18_s16 }
   0x3   :  { %p1563_p1 = scmp.lt.u32.totalorder %s1559_s19, %s2086_s1 }
   0x5   :  { %p1565_p2 = pnand %p1563_p1, %p1560_p0 }
   0x7   :  { %1568 = shalt.err (!%p1565_p2)
}
   0x8   :  { %s1569_s24 = scalar_lea.vmem %s19_s16, 4096  ;;  %p1574_p4 = scmp.lt.s32.totalorder %s19_s16, %s19_s16 }
   0x9   :  { %p1570_p3 = scmp.ne.s32.totalorder %s19_s16, %s1569_s24  ;;  %p1575_p5 = scmp.lt.s32.totalorder %s1569_s24, %s1569_s24 }
   0xb   :  { %p1576_p6 = por %p1575_p5, %p1574_p4 }
   0xd   :  { %p1577_p7 = pnand %p1576_p6, %p1570_p3 }
   0xf   :  { %1580 = shalt.err (!%p1577_p7)
}
  0x10   :  { %s1608_s25 = smov 256   ;;  %s1609_s26 = smov 16  }
  0x11   :  { %24 = dma.hbm_to_vmem [thread:$0]  %s2086_s1, 4096, %s19_s16, [#allocation3], %s1608_s25, %s1608_s25, %s1609_s26  }
  0x12   :  { %1603 = dma.done.wait [#allocation3], 4096  }
  0x13   :  { %1604 = vsyncadd [#allocation3], 4294963200  ;;  %v1610_v0 = vmov 0   ;;  %v1654_v1 = vld [vmem:[#allocation2 + $0x4] ss:$16 sps:$4 sm:$0xff]   ;;  %v317_v35 = vlaneseq  ;;  %vm1613_vm0 = vmmov 0  }
  0x14   :  { %258 = vmatprep.mubr.bf16.mxu0 %v1610_v0  ;;  %299 = vmatprep.mubr.bf16.mxu1 %v1610_v0  ;;  %v1656_v2 = vld [vmem:[#allocation2 + $0xc] ss:$16 sps:$4 sm:$0xff]   ;;  %v1659_v3 = vld [vmem:[#allocation2] ss:$16 sps:$4 sm:$0xff]   ;;  %v1661_v4 = vld [vmem:[#allocation2 + $0x8] ss:$16 sps:$4 sm:$0xff]  }
  0x15   :  { %226 = vmatprep.subr.bf16.mxu0 %v1654_v1  ;;  %267 = vmatprep.subr.bf16.mxu1 %v1656_v2  ;;  %v1664_v5 = vld [vmem:[#allocation2 + $0x24] ss:$16 sps:$4 sm:$0xff]   ;;  %v1668_v6 = vld [vmem:[#allocation2 + $0x2c] ss:$16 sps:$4 sm:$0xff]   ;;  %v1670_v7 = vld [vmem:[#allocation2 + $0x20] ss:$16 sps:$4 sm:$0xff]  }
  0x16   :  { %227 = vmatpush1.bf16.msra.mxu0 %v1659_v3  ;;  %268 = vmatpush1.bf16.msra.mxu1 %v1661_v4  ;;  %v1673_v8 = vld [vmem:[#allocation2 + $0x28] ss:$16 sps:$4 sm:$0xff]   ;;  %v1676_v9 = vld [vmem:[#allocation2 + $0x44] ss:$16 sps:$4 sm:$0xff]   ;;  %v1678_v10 = vld [vmem:[#allocation2 + $0x4c] ss:$16 sps:$4 sm:$0xff]  }
  0x17   :  { %228 = vmatprep.subr.bf16.mxu0 %v1664_v5  ;;  %269 = vmatprep.subr.bf16.mxu1 %v1668_v6  ;;  %v1680_v11 = vld [vmem:[#allocation2 + $0x40] ss:$16 sps:$4 sm:$0xff]   ;;  %v1682_v12 = vld [vmem:[#allocation2 + $0x48] ss:$16 sps:$4 sm:$0xff]   ;;  %v1686_v13 = vld [vmem:[#allocation2 + $0x64] ss:$16 sps:$4 sm:$0xff]  }
  0x18   :  { %v1690_v14 = vld [vmem:[#allocation2 + $0x6c] ss:$16 sps:$4 sm:$0xff]   ;;  %v1692_v15 = vld [vmem:[#allocation2 + $0x60] ss:$16 sps:$4 sm:$0xff]   ;;  %v1696_v16 = vld [vmem:[#allocation2 + $0x68] ss:$16 sps:$4 sm:$0xff]  }
  0x19   :  { %v1698_v17 = vld [vmem:[#allocation2 + $0x84] ss:$16 sps:$4 sm:$0xff]   ;;  %v1702_v18 = vld [vmem:[#allocation2 + $0x8c] ss:$16 sps:$4 sm:$0xff]   ;;  %v1704_v19 = vld [vmem:[#allocation2 + $0x80] ss:$16 sps:$4 sm:$0xff]  }
  0x1a   :  { %229 = vmatpush1.bf16.msra.mxu0 %v1670_v7  ;;  %270 = vmatpush1.bf16.msra.mxu1 %v1673_v8  ;;  %v1706_v20 = vld [vmem:[#allocation2 + $0x88] ss:$16 sps:$4 sm:$0xff]   ;;  %v1710_v21 = vld [vmem:[#allocation2 + $0xa4] ss:$16 sps:$4 sm:$0xff]   ;;  %v1714_v22 = vld [vmem:[#allocation2 + $0xac] ss:$16 sps:$4 sm:$0xff]  }
  0x1b   :  { %230 = vmatprep.subr.bf16.mxu0 %v1676_v9  ;;  %271 = vmatprep.subr.bf16.mxu1 %v1678_v10  ;;  %v1716_v23 = vld [vmem:[#allocation2 + $0xa0] ss:$16 sps:$4 sm:$0xff]   ;;  %v1720_v24 = vld [vmem:[#allocation2 + $0xa8] ss:$16 sps:$4 sm:$0xff]   ;;  %v1722_v25 = vld [vmem:[#allocation2 + $0xc4] ss:$16 sps:$4 sm:$0xff]  }
  0x1c   :  { %v1726_v26 = vld [vmem:[#allocation2 + $0xcc] ss:$16 sps:$4 sm:$0xff]   ;;  %v1728_v27 = vld [vmem:[#allocation2 + $0xc0] ss:$16 sps:$4 sm:$0xff]   ;;  %v1730_v28 = vld [vmem:[#allocation2 + $0xc8] ss:$16 sps:$4 sm:$0xff]  }
  0x1d   :  { %v1732_v29 = vld [vmem:[#allocation2 + $0xe4] ss:$16 sps:$4 sm:$0xff]   ;;  %v1734_v30 = vld [vmem:[#allocation2 + $0xec] ss:$16 sps:$4 sm:$0xff]   ;;  %v1742_v31 = vld [vmem:[#allocation2 + $0xe0] ss:$16 sps:$4 sm:$0xff]  }
  0x1e   :  { %231 = vmatpush1.bf16.msra.mxu0 %v1680_v11  ;;  %272 = vmatpush1.bf16.msra.mxu1 %v1682_v12  ;;  %v1744_v32 = vld [vmem:[#allocation2 + $0xe8] ss:$16 sps:$4 sm:$0xff]   ;;  %v1611_v33 = vmov 1983009808   ;;  %v318_v37 = vshrl.u32 %v317_v35, 7  ;;  %v33_v51 = vld [vmem:[%s2085_s0] sm:$0xff] }
  0x1f   :  { %232 = vmatprep.subr.bf16.mxu0 %v1686_v13  ;;  %273 = vmatprep.subr.bf16.mxu1 %v1690_v14  ;;  %v315_v34 = vunpack.c.l.s4 %v1611_v33  ;;  %s1614_s7 = smov [#allocation5]   ;;  %vm1343_vm1 = vcmask 107520  }
  0x20   :  { %s1351_s8 = sshll.u32 %s1614_s7, 4  ;;  %s1352_s8 = int_to_ptr.vmem [resolvable:$true] %s1351_s8 }
  0x21   :  { %v316_v36 = vunpack.c.0.s8 %v315_v34  ;;  %s1581_s9 = scalar_lea.vmem %s1352_s8, 32  ;;  %p1586_p9 = scmp.lt.s32.totalorder %s1352_s8, %s1352_s8 }
  0x22   :  { %233 = vmatpush1.bf16.msra.mxu0 %v1692_v15  ;;  %274 = vmatpush1.bf16.msra.mxu1 %v1696_v16  ;;  %p1582_p8 = scmp.ne.s32.totalorder %s1352_s8, %s1581_s9  ;;  %p1587_p10 = scmp.lt.s32.totalorder %s1581_s9, %s1581_s9 }
  0x23   :  { %234 = vmatprep.subr.bf16.mxu0 %v1698_v17  ;;  %275 = vmatprep.subr.bf16.mxu1 %v1702_v18  ;;  %v1788_v40 = vsub.s32 %v316_v36, %v318_v37 }
  0x24   :  { %p1588_p11 = por %p1587_p10, %p1586_p9 }
  0x26   :  { %235 = vmatpush1.bf16.msra.mxu0 %v1704_v19  ;;  %276 = vmatpush1.bf16.msra.mxu1 %v1706_v20  ;;  %p1589_p12 = pnand %p1588_p11, %p1582_p8 }
  0x27   :  { %236 = vmatprep.subr.bf16.mxu0 %v1710_v21  ;;  %277 = vmatprep.subr.bf16.mxu1 %v1714_v22 }
  0x2a   :  { %237 = vmatpush1.bf16.msra.mxu0 %v1716_v23  ;;  %278 = vmatpush1.bf16.msra.mxu1 %v1720_v24 }
  0x2b   :  { %238 = vmatprep.subr.bf16.mxu0 %v1722_v25  ;;  %279 = vmatprep.subr.bf16.mxu1 %v1726_v26 }
  0x2e   :  { %239 = vmatpush1.bf16.msra.mxu0 %v1728_v27  ;;  %280 = vmatpush1.bf16.msra.mxu1 %v1730_v28 }
  0x2f   :  { %240 = vmatprep.subr.bf16.mxu0 %v1732_v29  ;;  %281 = vmatprep.subr.bf16.mxu1 %v1734_v30 }
  0x32   :  { %241 = vmatpush1.bf16.msra.mxu0 %v1742_v31  ;;  %282 = vmatpush1.bf16.msra.mxu1 %v1744_v32 }
  0x33   :  { %352 = vmatprep.subr.bf16.mxu0 %v1654_v1  ;;  %393 = vmatprep.subr.bf16.mxu1 %v1656_v2 }
  0x35   :  { %259 = vmatmul.mubr.bf16.vlgmr.msra.gmra.mrb[0].mxu0 %v1610_v0  ;;  %300 = vmatmul.mubr.bf16.vlgmr.msra.gmra.mrb[0].mxu1 %v1610_v0 }
  0x36   :  { %353 = vmatpush1.bf16.msra.mxu0 %v1659_v3  ;;  %394 = vmatpush1.bf16.msra.mxu1 %v1661_v4 }
  0x37   :  { %354 = vmatprep.subr.bf16.mxu0 %v1664_v5  ;;  %395 = vmatprep.subr.bf16.mxu1 %v1668_v6 }
  0x38   :  { %384 = vmatprep.mubr.bf16.mxu0 %v1610_v0  ;;  %425 = vmatprep.mubr.bf16.mxu1 %v1610_v0 }
  0x3a   :  { %355 = vmatpush1.bf16.msra.mxu0 %v1670_v7  ;;  %396 = vmatpush1.bf16.msra.mxu1 %v1673_v8 }
  0x3b   :  { %356 = vmatprep.subr.bf16.mxu0 %v1676_v9  ;;  %397 = vmatprep.subr.bf16.mxu1 %v1678_v10 }
  0x3e   :  { %357 = vmatpush1.bf16.msra.mxu0 %v1680_v11  ;;  %398 = vmatpush1.bf16.msra.mxu1 %v1682_v12 }
  0x3f   :  { %358 = vmatprep.subr.bf16.mxu0 %v1686_v13  ;;  %399 = vmatprep.subr.bf16.mxu1 %v1690_v14 }
  0x42   :  { %359 = vmatpush1.bf16.msra.mxu0 %v1692_v15  ;;  %400 = vmatpush1.bf16.msra.mxu1 %v1696_v16 }
  0x43   :  { %360 = vmatprep.subr.bf16.mxu0 %v1698_v17  ;;  %401 = vmatprep.subr.bf16.mxu1 %v1702_v18 }
  0x46   :  { %361 = vmatpush1.bf16.msra.mxu0 %v1704_v19  ;;  %402 = vmatpush1.bf16.msra.mxu1 %v1706_v20 }
  0x47   :  { %362 = vmatprep.subr.bf16.mxu0 %v1710_v21  ;;  %403 = vmatprep.subr.bf16.mxu1 %v1714_v22 }
  0x4a   :  { %363 = vmatpush1.bf16.msra.mxu0 %v1716_v23  ;;  %404 = vmatpush1.bf16.msra.mxu1 %v1720_v24 }
  0x4b   :  { %364 = vmatprep.subr.bf16.mxu0 %v1722_v25  ;;  %405 = vmatprep.subr.bf16.mxu1 %v1726_v26 }
  0x4e   :  { %365 = vmatpush1.bf16.msra.mxu0 %v1728_v27  ;;  %406 = vmatpush1.bf16.msra.mxu1 %v1730_v28 }
  0x4f   :  { %366 = vmatprep.subr.bf16.mxu0 %v1732_v29  ;;  %407 = vmatprep.subr.bf16.mxu1 %v1734_v30 }
  0x52   :  { %367 = vmatpush1.bf16.msra.mxu0 %v1742_v31  ;;  %408 = vmatpush1.bf16.msra.mxu1 %v1744_v32 }
  0x53   :  { %478 = vmatprep.subr.bf16.mxu0 %v1654_v1  ;;  %519 = vmatprep.subr.bf16.mxu1 %v1656_v2 }
 0x108   :  { %v260_v38 = vpop.f32.mrb[0].mxu0  ;;  %v301_v39 = vpop.f32.mrb[0].mxu1 }
 0x109   :  { %v262_v41 = vpop.f32.mrb[1].mxu0  ;;  %v303_v42 = vpop.f32.mrb[1].mxu1 }
 0x10a   :  { %v312_v43 = vcombine.low %v260_v38, %v262_v41  ;;  %v313_v44 = vcombine.low %v301_v39, %v303_v42  ;;  %v264_v45 = vpop.f32.mrb[2].mxu0  ;;  %v305_v46 = vpop.f32.mrb[2].mxu1 }
 0x10b   :  { %v265_v47 = vpop.f32.mrb[3].mxu0  ;;  %v306_v48 = vpop.f32.mrb[3].mxu1 }
 0x10c   :  { %v320_v49 = vrot.slane %v312_v43, %v1788_v40  ;;  %v327_v50 = vrot.slane %v313_v44, %v1788_v40 }
 0x10e   :  { %v328_v52 = vcombine.low %v320_v49, %v327_v50  ;;  %v1392_v50 = vld [vmem:[%s2085_s0 + $0x8] sm:$0xff] }
 0x110   :  { %v330_v53 = vadd.f32 %v328_v52, %v33_v51 }
 0x112   :  { %v331_v54 = vmul.f32 0.5, %v330_v53  ;;  %v336_v55 = vrot.slane %v330_v53, 6 }
 0x114   :  { %1501 = vtanh.f32 %v331_v54 }
 0x115   :  { %1503 = vtanh.f32 %v336_v55 }
 0x11e   :  { %v1502_v56 = vpop.eup %1501 }
 0x11f   :  { %v333_v57 = vmul.f32 0.5, %v1502_v56  ;;  %v1504_v60 = vpop.eup %1503 }
 0x121   :  { %v334_v58 = vadd.f32 0.5, %v333_v57 }
 0x123   :  { %v340_v59 = vrot.slane %v334_v58, 2  ;;  %v343_v62 = vmul.f32 %v1504_v60, %v334_v58  ;;  %v346_v33 = vrot.slane %v334_v58, 4 }
 0x125   :  { %v342_v61 = vmul.f32 0.0, %v340_v59 }
 0x127   :  { %v1795_v63 = vadd.f32 %v343_v62, %v342_v61 }
 0x129   :  { %1505 = vtanh.f32 %v1795_v63 }
 0x133   :  { %v1506_v34 = vpop.eup %1505 }
 0x134   :  { %v348_v35 = vmul.f32 %v1506_v34, %v346_v33 }
 0x136   :  { %v351_v36 = vpack.c.bf16 %v348_v35, %v348_v35 }
 0x138   :  { %385 = vmatmul.mubr.bf16.vlgmr.msra.gmra.mrb[4].mxu0 %v351_v36  ;;  %426 = vmatmul.mubr.bf16.vlgmr.msra.gmra.mrb[4].mxu1 %v351_v36 }
 0x139   :  { %479 = vmatpush1.bf16.msra.mxu0 %v1659_v3  ;;  %520 = vmatpush1.bf16.msra.mxu1 %v1661_v4 }
 0x13a   :  { %480 = vmatprep.subr.bf16.mxu0 %v1664_v5  ;;  %521 = vmatprep.subr.bf16.mxu1 %v1668_v6 }
 0x13b   :  { %510 = vmatprep.mubr.bf16.mxu0 %v1610_v0  ;;  %551 = vmatprep.mubr.bf16.mxu1 %v1610_v0 }
 0x13d   :  { %481 = vmatpush1.bf16.msra.mxu0 %v1670_v7  ;;  %522 = vmatpush1.bf16.msra.mxu1 %v1673_v8 }
 0x13e   :  { %482 = vmatprep.subr.bf16.mxu0 %v1676_v9  ;;  %523 = vmatprep.subr.bf16.mxu1 %v1678_v10 }
 0x141   :  { %483 = vmatpush1.bf16.msra.mxu0 %v1680_v11  ;;  %524 = vmatpush1.bf16.msra.mxu1 %v1682_v12 }
 0x142   :  { %484 = vmatprep.subr.bf16.mxu0 %v1686_v13  ;;  %525 = vmatprep.subr.bf16.mxu1 %v1690_v14 }
 0x145   :  { %485 = vmatpush1.bf16.msra.mxu0 %v1692_v15  ;;  %526 = vmatpush1.bf16.msra.mxu1 %v1696_v16 }
 0x146   :  { %486 = vmatprep.subr.bf16.mxu0 %v1698_v17  ;;  %527 = vmatprep.subr.bf16.mxu1 %v1702_v18 }
 0x149   :  { %487 = vmatpush1.bf16.msra.mxu0 %v1704_v19  ;;  %528 = vmatpush1.bf16.msra.mxu1 %v1706_v20 }
 0x14a   :  { %488 = vmatprep.subr.bf16.mxu0 %v1710_v21  ;;  %529 = vmatprep.subr.bf16.mxu1 %v1714_v22 }
 0x14d   :  { %489 = vmatpush1.bf16.msra.mxu0 %v1716_v23  ;;  %530 = vmatpush1.bf16.msra.mxu1 %v1720_v24 }
 0x14e   :  { %490 = vmatprep.subr.bf16.mxu0 %v1722_v25  ;;  %531 = vmatprep.subr.bf16.mxu1 %v1726_v26 }
 0x151   :  { %491 = vmatpush1.bf16.msra.mxu0 %v1728_v27  ;;  %532 = vmatpush1.bf16.msra.mxu1 %v1730_v28 }
 0x152   :  { %492 = vmatprep.subr.bf16.mxu0 %v1732_v29  ;;  %533 = vmatprep.subr.bf16.mxu1 %v1734_v30 }
 0x155   :  { %493 = vmatpush1.bf16.msra.mxu0 %v1742_v31  ;;  %534 = vmatpush1.bf16.msra.mxu1 %v1744_v32 }
 0x156   :  { %604 = vmatprep.subr.bf16.mxu0 %v1654_v1  ;;  %645 = vmatprep.subr.bf16.mxu1 %v1656_v2 }
 0x20b   :  { %v386_v37 = vpop.f32.mrb[4].mxu0  ;;  %v427_v38 = vpop.f32.mrb[4].mxu1 }
 0x20c   :  { %v388_v39 = vpop.f32.mrb[5].mxu0  ;;  %v429_v41 = vpop.f32.mrb[5].mxu1 }
 0x20d   :  { %v438_v42 = vcombine.low %v386_v37, %v388_v39  ;;  %v439_v43 = vcombine.low %v427_v38, %v429_v41  ;;  %v390_v44 = vpop.f32.mrb[6].mxu0  ;;  %v431_v45 = vpop.f32.mrb[6].mxu1 }
 0x20e   :  { %v391_v46 = vpop.f32.mrb[7].mxu0  ;;  %v432_v47 = vpop.f32.mrb[7].mxu1 }
 0x20f   :  { %v446_v48 = vrot.slane %v438_v42, %v1788_v40  ;;  %v453_v49 = vrot.slane %v439_v43, %v1788_v40 }
 0x211   :  { %v454_v51 = vcombine.low %v446_v48, %v453_v49  ;;  %v1393_v49 = vld [vmem:[%s2085_s0 + $0x10] sm:$0xff] }
 0x213   :  { %v456_v52 = vadd.f32 %v1392_v50, %v454_v51 }
 0x215   :  { %v457_v53 = vmul.f32 0.5, %v456_v52  ;;  %v462_v54 = vrot.slane %v456_v52, 6 }
 0x217   :  { %1507 = vtanh.f32 %v457_v53 }
 0x218   :  { %1509 = vtanh.f32 %v462_v54 }
 0x221   :  { %v1508_v55 = vpop.eup %1507 }
 0x222   :  { %v459_v56 = vmul.f32 0.5, %v1508_v55  ;;  %v1510_v59 = vpop.eup %1509 }
 0x224   :  { %v460_v57 = vadd.f32 0.5, %v459_v56 }
 0x226   :  { %v466_v58 = vrot.slane %v460_v57, 2  ;;  %v469_v61 = vmul.f32 %v1510_v59, %v460_v57  ;;  %v472_v33 = vrot.slane %v460_v57, 4 }
 0x228   :  { %v468_v60 = vmul.f32 %v466_v58, %v1795_v63 }
 0x22a   :  { %v1838_v62 = vadd.f32 %v469_v61, %v468_v60 }
 0x22c   :  { %1511 = vtanh.f32 %v1838_v62 }
 0x236   :  { %v1512_v34 = vpop.eup %1511 }
 0x237   :  { %v474_v35 = vmul.f32 %v1512_v34, %v472_v33 }
 0x239   :  { %v477_v36 = vpack.c.bf16 %v474_v35, %v474_v35 }
 0x23b   :  { %511 = vmatmul.mubr.bf16.vlgmr.msra.gmra.mrb[8].mxu0 %v477_v36  ;;  %552 = vmatmul.mubr.bf16.vlgmr.msra.gmra.mrb[8].mxu1 %v477_v36 }
 0x23c   :  { %605 = vmatpush1.bf16.msra.mxu0 %v1659_v3  ;;  %646 = vmatpush1.bf16.msra.mxu1 %v1661_v4 }
 0x23d   :  { %606 = vmatprep.subr.bf16.mxu0 %v1664_v5  ;;  %647 = vmatprep.subr.bf16.mxu1 %v1668_v6 }
 0x23e   :  { %636 = vmatprep.mubr.bf16.mxu0 %v1610_v0  ;;  %677 = vmatprep.mubr.bf16.mxu1 %v1610_v0 }
 0x240   :  { %607 = vmatpush1.bf16.msra.mxu0 %v1670_v7  ;;  %648 = vmatpush1.bf16.msra.mxu1 %v1673_v8 }
 0x241   :  { %608 = vmatprep.subr.bf16.mxu0 %v1676_v9  ;;  %649 = vmatprep.subr.bf16.mxu1 %v1678_v10 }
 0x244   :  { %609 = vmatpush1.bf16.msra.mxu0 %v1680_v11  ;;  %650 = vmatpush1.bf16.msra.mxu1 %v1682_v12 }
 0x245   :  { %610 = vmatprep.subr.bf16.mxu0 %v1686_v13  ;;  %651 = vmatprep.subr.bf16.mxu1 %v1690_v14 }
 0x248   :  { %611 = vmatpush1.bf16.msra.mxu0 %v1692_v15  ;;  %652 = vmatpush1.bf16.msra.mxu1 %v1696_v16 }
 0x249   :  { %612 = vmatprep.subr.bf16.mxu0 %v1698_v17  ;;  %653 = vmatprep.subr.bf16.mxu1 %v1702_v18 }
 0x24c   :  { %613 = vmatpush1.bf16.msra.mxu0 %v1704_v19  ;;  %654 = vmatpush1.bf16.msra.mxu1 %v1706_v20 }
 0x24d   :  { %614 = vmatprep.subr.bf16.mxu0 %v1710_v21  ;;  %655 = vmatprep.subr.bf16.mxu1 %v1714_v22 }
 0x250   :  { %615 = vmatpush1.bf16.msra.mxu0 %v1716_v23  ;;  %656 = vmatpush1.bf16.msra.mxu1 %v1720_v24 }
 0x251   :  { %616 = vmatprep.subr.bf16.mxu0 %v1722_v25  ;;  %657 = vmatprep.subr.bf16.mxu1 %v1726_v26 }
 0x254   :  { %617 = vmatpush1.bf16.msra.mxu0 %v1728_v27  ;;  %658 = vmatpush1.bf16.msra.mxu1 %v1730_v28 }
 0x255   :  { %618 = vmatprep.subr.bf16.mxu0 %v1732_v29  ;;  %659 = vmatprep.subr.bf16.mxu1 %v1734_v30 }
 0x258   :  { %619 = vmatpush1.bf16.msra.mxu0 %v1742_v31  ;;  %660 = vmatpush1.bf16.msra.mxu1 %v1744_v32 }
 0x259   :  { %730 = vmatprep.subr.bf16.mxu0 %v1654_v1  ;;  %771 = vmatprep.subr.bf16.mxu1 %v1656_v2 }
 0x30e   :  { %v512_v63 = vpop.f32.mrb[8].mxu0  ;;  %v553_v37 = vpop.f32.mrb[8].mxu1 }
 0x30f   :  { %v514_v38 = vpop.f32.mrb[9].mxu0  ;;  %v555_v39 = vpop.f32.mrb[9].mxu1 }
 0x310   :  { %v564_v41 = vcombine.low %v512_v63, %v514_v38  ;;  %v565_v42 = vcombine.low %v553_v37, %v555_v39  ;;  %v516_v43 = vpop.f32.mrb[10].mxu0  ;;  %v557_v44 = vpop.f32.mrb[10].mxu1 }
 0x311   :  { %v517_v45 = vpop.f32.mrb[11].mxu0  ;;  %v558_v46 = vpop.f32.mrb[11].mxu1 }
 0x312   :  { %v572_v47 = vrot.slane %v564_v41, %v1788_v40  ;;  %v579_v48 = vrot.slane %v565_v42, %v1788_v40 }
 0x314   :  { %v580_v50 = vcombine.low %v572_v47, %v579_v48  ;;  %v1394_v48 = vld [vmem:[%s2085_s0 + $0x18] sm:$0xff] }
 0x316   :  { %v582_v51 = vadd.f32 %v1393_v49, %v580_v50 }
 0x318   :  { %v583_v52 = vmul.f32 0.5, %v582_v51  ;;  %v588_v53 = vrot.slane %v582_v51, 6 }
 0x31a   :  { %1513 = vtanh.f32 %v583_v52 }
 0x31b   :  { %1515 = vtanh.f32 %v588_v53 }
 0x324   :  { %v1514_v54 = vpop.eup %1513 }
 0x325   :  { %v585_v55 = vmul.f32 0.5, %v1514_v54  ;;  %v1516_v58 = vpop.eup %1515 }
 0x327   :  { %v586_v56 = vadd.f32 0.5, %v585_v55 }
 0x329   :  { %v592_v57 = vrot.slane %v586_v56, 2  ;;  %v595_v60 = vmul.f32 %v1516_v58, %v586_v56  ;;  %v598_v33 = vrot.slane %v586_v56, 4 }
 0x32b   :  { %v594_v59 = vmul.f32 %v592_v57, %v1838_v62 }
 0x32d   :  { %v1881_v61 = vadd.f32 %v595_v60, %v594_v59 }
 0x32f   :  { %1517 = vtanh.f32 %v1881_v61 }
 0x339   :  { %v1518_v34 = vpop.eup %1517 }
 0x33a   :  { %v600_v35 = vmul.f32 %v1518_v34, %v598_v33 }
 0x33c   :  { %v603_v36 = vpack.c.bf16 %v600_v35, %v600_v35 }
 0x33e   :  { %637 = vmatmul.mubr.bf16.vlgmr.msra.gmra.mrb[12].mxu0 %v603_v36  ;;  %678 = vmatmul.mubr.bf16.vlgmr.msra.gmra.mrb[12].mxu1 %v603_v36 }
 0x33f   :  { %731 = vmatpush1.bf16.msra.mxu0 %v1659_v3  ;;  %772 = vmatpush1.bf16.msra.mxu1 %v1661_v4 }
 0x340   :  { %732 = vmatprep.subr.bf16.mxu0 %v1664_v5  ;;  %773 = vmatprep.subr.bf16.mxu1 %v1668_v6 }
 0x341   :  { %762 = vmatprep.mubr.bf16.mxu0 %v1610_v0  ;;  %803 = vmatprep.mubr.bf16.mxu1 %v1610_v0 }
 0x343   :  { %733 = vmatpush1.bf16.msra.mxu0 %v1670_v7  ;;  %774 = vmatpush1.bf16.msra.mxu1 %v1673_v8 }
 0x344   :  { %734 = vmatprep.subr.bf16.mxu0 %v1676_v9  ;;  %775 = vmatprep.subr.bf16.mxu1 %v1678_v10 }
 0x347   :  { %735 = vmatpush1.bf16.msra.mxu0 %v1680_v11  ;;  %776 = vmatpush1.bf16.msra.mxu1 %v1682_v12 }
 0x348   :  { %736 = vmatprep.subr.bf16.mxu0 %v1686_v13  ;;  %777 = vmatprep.subr.bf16.mxu1 %v1690_v14 }
 0x34b   :  { %737 = vmatpush1.bf16.msra.mxu0 %v1692_v15  ;;  %778 = vmatpush1.bf16.msra.mxu1 %v1696_v16 }
 0x34c   :  { %738 = vmatprep.subr.bf16.mxu0 %v1698_v17  ;;  %779 = vmatprep.subr.bf16.mxu1 %v1702_v18 }
 0x34f   :  { %739 = vmatpush1.bf16.msra.mxu0 %v1704_v19  ;;  %780 = vmatpush1.bf16.msra.mxu1 %v1706_v20 }
 0x350   :  { %740 = vmatprep.subr.bf16.mxu0 %v1710_v21  ;;  %781 = vmatprep.subr.bf16.mxu1 %v1714_v22 }
 0x353   :  { %741 = vmatpush1.bf16.msra.mxu0 %v1716_v23  ;;  %782 = vmatpush1.bf16.msra.mxu1 %v1720_v24 }
 0x354   :  { %742 = vmatprep.subr.bf16.mxu0 %v1722_v25  ;;  %783 = vmatprep.subr.bf16.mxu1 %v1726_v26 }
 0x357   :  { %743 = vmatpush1.bf16.msra.mxu0 %v1728_v27  ;;  %784 = vmatpush1.bf16.msra.mxu1 %v1730_v28 }
 0x358   :  { %744 = vmatprep.subr.bf16.mxu0 %v1732_v29  ;;  %785 = vmatprep.subr.bf16.mxu1 %v1734_v30 }
 0x35b   :  { %745 = vmatpush1.bf16.msra.mxu0 %v1742_v31  ;;  %786 = vmatpush1.bf16.msra.mxu1 %v1744_v32 }
 0x35c   :  { %856 = vmatprep.subr.bf16.mxu0 %v1654_v1  ;;  %897 = vmatprep.subr.bf16.mxu1 %v1656_v2 }
 0x411   :  { %v638_v62 = vpop.f32.mrb[12].mxu0  ;;  %v679_v63 = vpop.f32.mrb[12].mxu1 }
 0x412   :  { %v640_v37 = vpop.f32.mrb[13].mxu0  ;;  %v681_v38 = vpop.f32.mrb[13].mxu1 }
 0x413   :  { %v690_v39 = vcombine.low %v638_v62, %v640_v37  ;;  %v691_v41 = vcombine.low %v679_v63, %v681_v38  ;;  %v642_v42 = vpop.f32.mrb[14].mxu0  ;;  %v683_v43 = vpop.f32.mrb[14].mxu1 }
 0x414   :  { %v643_v44 = vpop.f32.mrb[15].mxu0  ;;  %v684_v45 = vpop.f32.mrb[15].mxu1 }
 0x415   :  { %v698_v46 = vrot.slane %v690_v39, %v1788_v40  ;;  %v705_v47 = vrot.slane %v691_v41, %v1788_v40 }
 0x417   :  { %v706_v49 = vcombine.low %v698_v46, %v705_v47  ;;  %v1395_v47 = vld [vmem:[%s2085_s0 + $0x20] sm:$0xff] }
 0x419   :  { %v708_v50 = vadd.f32 %v1394_v48, %v706_v49 }
 0x41b   :  { %v709_v51 = vmul.f32 0.5, %v708_v50  ;;  %v714_v52 = vrot.slane %v708_v50, 6 }
 0x41d   :  { %1519 = vtanh.f32 %v709_v51 }
 0x41e   :  { %1521 = vtanh.f32 %v714_v52 }
 0x427   :  { %v1520_v53 = vpop.eup %1519 }
 0x428   :  { %v711_v54 = vmul.f32 0.5, %v1520_v53  ;;  %v1522_v57 = vpop.eup %1521 }
 0x42a   :  { %v712_v55 = vadd.f32 0.5, %v711_v54 }
 0x42c   :  { %v718_v56 = vrot.slane %v712_v55, 2  ;;  %v721_v59 = vmul.f32 %v1522_v57, %v712_v55  ;;  %v724_v33 = vrot.slane %v712_v55, 4 }
 0x42e   :  { %v720_v58 = vmul.f32 %v718_v56, %v1881_v61 }
 0x430   :  { %v1924_v60 = vadd.f32 %v721_v59, %v720_v58 }
 0x432   :  { %1523 = vtanh.f32 %v1924_v60 }
 0x43c   :  { %v1524_v34 = vpop.eup %1523 }
 0x43d   :  { %v726_v35 = vmul.f32 %v1524_v34, %v724_v33 }
 0x43f   :  { %v729_v36 = vpack.c.bf16 %v726_v35, %v726_v35 }
 0x441   :  { %763 = vmatmul.mubr.bf16.vlgmr.msra.gmra.mrb[16].mxu0 %v729_v36  ;;  %804 = vmatmul.mubr.bf16.vlgmr.msra.gmra.mrb[16].mxu1 %v729_v36 }
 0x442   :  { %857 = vmatpush1.bf16.msra.mxu0 %v1659_v3  ;;  %898 = vmatpush1.bf16.msra.mxu1 %v1661_v4 }
 0x443   :  { %858 = vmatprep.subr.bf16.mxu0 %v1664_v5  ;;  %899 = vmatprep.subr.bf16.mxu1 %v1668_v6 }
 0x444   :  { %888 = vmatprep.mubr.bf16.mxu0 %v1610_v0  ;;  %929 = vmatprep.mubr.bf16.mxu1 %v1610_v0 }
 0x446   :  { %859 = vmatpush1.bf16.msra.mxu0 %v1670_v7  ;;  %900 = vmatpush1.bf16.msra.mxu1 %v1673_v8 }
 0x447   :  { %860 = vmatprep.subr.bf16.mxu0 %v1676_v9  ;;  %901 = vmatprep.subr.bf16.mxu1 %v1678_v10 }
 0x44a   :  { %861 = vmatpush1.bf16.msra.mxu0 %v1680_v11  ;;  %902 = vmatpush1.bf16.msra.mxu1 %v1682_v12 }
 0x44b   :  { %862 = vmatprep.subr.bf16.mxu0 %v1686_v13  ;;  %903 = vmatprep.subr.bf16.mxu1 %v1690_v14 }
 0x44e   :  { %863 = vmatpush1.bf16.msra.mxu0 %v1692_v15  ;;  %904 = vmatpush1.bf16.msra.mxu1 %v1696_v16 }
 0x44f   :  { %864 = vmatprep.subr.bf16.mxu0 %v1698_v17  ;;  %905 = vmatprep.subr.bf16.mxu1 %v1702_v18 }
 0x452   :  { %865 = vmatpush1.bf16.msra.mxu0 %v1704_v19  ;;  %906 = vmatpush1.bf16.msra.mxu1 %v1706_v20 }
 0x453   :  { %866 = vmatprep.subr.bf16.mxu0 %v1710_v21  ;;  %907 = vmatprep.subr.bf16.mxu1 %v1714_v22 }
 0x456   :  { %867 = vmatpush1.bf16.msra.mxu0 %v1716_v23  ;;  %908 = vmatpush1.bf16.msra.mxu1 %v1720_v24 }
 0x457   :  { %868 = vmatprep.subr.bf16.mxu0 %v1722_v25  ;;  %909 = vmatprep.subr.bf16.mxu1 %v1726_v26 }
 0x45a   :  { %869 = vmatpush1.bf16.msra.mxu0 %v1728_v27  ;;  %910 = vmatpush1.bf16.msra.mxu1 %v1730_v28 }
 0x45b   :  { %870 = vmatprep.subr.bf16.mxu0 %v1732_v29  ;;  %911 = vmatprep.subr.bf16.mxu1 %v1734_v30 }
 0x45e   :  { %871 = vmatpush1.bf16.msra.mxu0 %v1742_v31  ;;  %912 = vmatpush1.bf16.msra.mxu1 %v1744_v32 }
 0x45f   :  { %982 = vmatprep.subr.bf16.mxu0 %v1654_v1  ;;  %1023 = vmatprep.subr.bf16.mxu1 %v1656_v2 }
 0x514   :  { %v764_v61 = vpop.f32.mrb[16].mxu0  ;;  %v805_v62 = vpop.f32.mrb[16].mxu1 }
 0x515   :  { %v766_v63 = vpop.f32.mrb[17].mxu0  ;;  %v807_v37 = vpop.f32.mrb[17].mxu1 }
 0x516   :  { %v816_v38 = vcombine.low %v764_v61, %v766_v63  ;;  %v817_v39 = vcombine.low %v805_v62, %v807_v37  ;;  %v768_v41 = vpop.f32.mrb[18].mxu0  ;;  %v809_v42 = vpop.f32.mrb[18].mxu1 }
 0x517   :  { %v769_v43 = vpop.f32.mrb[19].mxu0  ;;  %v810_v44 = vpop.f32.mrb[19].mxu1 }
 0x518   :  { %v824_v45 = vrot.slane %v816_v38, %v1788_v40  ;;  %v831_v46 = vrot.slane %v817_v39, %v1788_v40 }
 0x51a   :  { %v832_v48 = vcombine.low %v824_v45, %v831_v46 }
 0x51c   :  { %v834_v49 = vadd.f32 %v1395_v47, %v832_v48 }
 0x51e   :  { %v835_v50 = vmul.f32 0.5, %v834_v49  ;;  %v840_v51 = vrot.slane %v834_v49, 6 }
 0x520   :  { %1525 = vtanh.f32 %v835_v50 }
 0x521   :  { %1527 = vtanh.f32 %v840_v51  ;;  %v1549_v51 = vld [vmem:[#allocation2] ss:$16 sps:$4 sm:$0xff]  }
 0x52a   :  { %v1526_v52 = vpop.eup %1525 }
 0x52b   :  { %v837_v53 = vmul.f32 0.5, %v1526_v52  ;;  %v1528_v56 = vpop.eup %1527  ;;  %v1550_v52 = vld [vmem:[#allocation2 + $0x8] ss:$16 sps:$4 sm:$0xff]  }
 0x52d   :  { %v838_v54 = vadd.f32 0.5, %v837_v53  ;;  %v1551_v53 = vld [vmem:[#allocation2 + $0x24] ss:$16 sps:$4 sm:$0xff]  }
 0x52f   :  { %v844_v55 = vrot.slane %v838_v54, 2  ;;  %v847_v58 = vmul.f32 %v1528_v56, %v838_v54  ;;  %v850_v33 = vrot.slane %v838_v54, 4  ;;  %v1552_v54 = vld [vmem:[#allocation2 + $0x2c] ss:$16 sps:$4 sm:$0xff]   ;;  %v1554_v56 = vld [vmem:[#allocation2 + $0x28] ss:$16 sps:$4 sm:$0xff]  }
 0x531   :  { %v846_v57 = vmul.f32 %v844_v55, %v1924_v60  ;;  %v1553_v55 = vld [vmem:[#allocation2 + $0x20] ss:$16 sps:$4 sm:$0xff]  }
 0x533   :  { %v1967_v59 = vadd.f32 %v847_v58, %v846_v57  ;;  %v1555_v57 = vld [vmem:[#allocation2 + $0x44] ss:$16 sps:$4 sm:$0xff]   ;;  %v1556_v58 = vld [vmem:[#allocation2 + $0x4c] ss:$16 sps:$4 sm:$0xff]  }
 0x535   :  { %1529 = vtanh.f32 %v1967_v59 }
 0x53f   :  { %v1530_v34 = vpop.eup %1529 }
 0x540   :  { %v852_v35 = vmul.f32 %v1530_v34, %v850_v33  ;;  %v1558_v33 = vld [vmem:[#allocation2 + $0x48] ss:$16 sps:$4 sm:$0xff]  }
 0x542   :  { %v855_v36 = vpack.c.bf16 %v852_v35, %v852_v35 }
 0x544   :  { %889 = vmatmul.mubr.bf16.vlgmr.msra.gmra.mrb[20].mxu0 %v855_v36  ;;  %930 = vmatmul.mubr.bf16.vlgmr.msra.gmra.mrb[20].mxu1 %v855_v36 }
 0x545   :  { %983 = vmatpush1.bf16.msra.mxu0 %v1659_v3  ;;  %1024 = vmatpush1.bf16.msra.mxu1 %v1661_v4 }
 0x546   :  { %984 = vmatprep.subr.bf16.mxu0 %v1664_v5  ;;  %1025 = vmatprep.subr.bf16.mxu1 %v1668_v6 }
 0x547   :  { %1014 = vmatprep.mubr.bf16.mxu0 %v1610_v0  ;;  %1055 = vmatprep.mubr.bf16.mxu1 %v1610_v0 }
 0x549   :  { %985 = vmatpush1.bf16.msra.mxu0 %v1670_v7  ;;  %1026 = vmatpush1.bf16.msra.mxu1 %v1673_v8 }
 0x54a   :  { %986 = vmatprep.subr.bf16.mxu0 %v1676_v9  ;;  %1027 = vmatprep.subr.bf16.mxu1 %v1678_v10 }
 0x54d   :  { %987 = vmatpush1.bf16.msra.mxu0 %v1680_v11  ;;  %1028 = vmatpush1.bf16.msra.mxu1 %v1682_v12 }
 0x54e   :  { %988 = vmatprep.subr.bf16.mxu0 %v1686_v13  ;;  %1029 = vmatprep.subr.bf16.mxu1 %v1690_v14 }
 0x551   :  { %989 = vmatpush1.bf16.msra.mxu0 %v1692_v15  ;;  %1030 = vmatpush1.bf16.msra.mxu1 %v1696_v16 }
 0x552   :  { %990 = vmatprep.subr.bf16.mxu0 %v1698_v17  ;;  %1031 = vmatprep.subr.bf16.mxu1 %v1702_v18 }
 0x555   :  { %991 = vmatpush1.bf16.msra.mxu0 %v1704_v19  ;;  %1032 = vmatpush1.bf16.msra.mxu1 %v1706_v20 }
 0x556   :  { %992 = vmatprep.subr.bf16.mxu0 %v1710_v21  ;;  %1033 = vmatprep.subr.bf16.mxu1 %v1714_v22 }
 0x559   :  { %993 = vmatpush1.bf16.msra.mxu0 %v1716_v23  ;;  %1034 = vmatpush1.bf16.msra.mxu1 %v1720_v24 }
 0x55a   :  { %994 = vmatprep.subr.bf16.mxu0 %v1722_v25  ;;  %1035 = vmatprep.subr.bf16.mxu1 %v1726_v26 }
 0x55d   :  { %995 = vmatpush1.bf16.msra.mxu0 %v1728_v27  ;;  %1036 = vmatpush1.bf16.msra.mxu1 %v1730_v28 }
 0x55e   :  { %996 = vmatprep.subr.bf16.mxu0 %v1732_v29  ;;  %1037 = vmatprep.subr.bf16.mxu1 %v1734_v30 }
 0x561   :  { %997 = vmatpush1.bf16.msra.mxu0 %v1742_v31  ;;  %1038 = vmatpush1.bf16.msra.mxu1 %v1744_v32 }
 0x562   :  { %1108 = vmatprep.subr.bf16.mxu0 %v1654_v1  ;;  %1149 = vmatprep.subr.bf16.mxu1 %v1656_v2  ;;  %v1396_v1 = vld [vmem:[%s2085_s0 + $0x28] sm:$0xff] }
 0x617   :  { %v890_v3 = vpop.f32.mrb[20].mxu0  ;;  %v931_v4 = vpop.f32.mrb[20].mxu1 }
 0x618   :  { %v892_v5 = vpop.f32.mrb[21].mxu0  ;;  %v933_v6 = vpop.f32.mrb[21].mxu1 }
 0x619   :  { %v942_v7 = vcombine.low %v890_v3, %v892_v5  ;;  %v943_v8 = vcombine.low %v931_v4, %v933_v6  ;;  %v894_v9 = vpop.f32.mrb[22].mxu0  ;;  %v935_v10 = vpop.f32.mrb[22].mxu1 }
 0x61a   :  { %v895_v11 = vpop.f32.mrb[23].mxu0  ;;  %v936_v12 = vpop.f32.mrb[23].mxu1  ;;  %v1612_v9 = vmov 0.0   ;;  %v1494_v10 = vld [vmem:[%s2087_s2 + $0x8] sm:$0xff]  }
 0x61b   :  { %v950_v60 = vrot.slane %v942_v7, %v1788_v40  ;;  %v957_v61 = vrot.slane %v943_v8, %v1788_v40  ;;  %v1493_v8 = vld [vmem:[%s2087_s2] sm:$0xff]   ;;  %v1495_v11 = vld [vmem:[%s2087_s2 + $0x10] sm:$0xff]   ;;  %v1496_v12 = vld [vmem:[%s2087_s2 + $0x18] sm:$0xff]  }
 0x61d   :  { %v958_v62 = vcombine.low %v950_v60, %v957_v61  ;;  %v1497_v60 = vld [vmem:[%s2087_s2 + $0x20] sm:$0xff]   ;;  %v1498_v61 = vld [vmem:[%s2087_s2 + $0x28] sm:$0xff]  }
 0x61f   :  { %v960_v2 = vadd.f32 %v1396_v1, %v958_v62  ;;  %v1499_v1 = vld [vmem:[%s2087_s2 + $0x30] sm:$0xff]   ;;  %v1500_v62 = vld [vmem:[%s2087_s2 + $0x38] sm:$0xff]  }
 0x621   :  { %v961_v63 = vmul.f32 0.5, %v960_v2  ;;  %v966_v37 = vrot.slane %v960_v2, 6 }
 0x623   :  { %1531 = vtanh.f32 %v961_v63 }
 0x624   :  { %1533 = vtanh.f32 %v966_v37 }
 0x62d   :  { %v1532_v38 = vpop.eup %1531 }
 0x62e   :  { %v963_v39 = vmul.f32 0.5, %v1532_v38  ;;  %v1534_v43 = vpop.eup %1533 }
 0x630   :  { %v964_v41 = vadd.f32 0.5, %v963_v39 }
 0x632   :  { %v970_v42 = vrot.slane %v964_v41, 2  ;;  %v973_v45 = vmul.f32 %v1534_v43, %v964_v41  ;;  %v976_v47 = vrot.slane %v964_v41, 4 }
 0x634   :  { %v972_v44 = vmul.f32 %v970_v42, %v1967_v59  ;;  %v1557_v59 = vld [vmem:[#allocation2 + $0x40] ss:$16 sps:$4 sm:$0xff]  }
 0x636   :  { %v2010_v46 = vadd.f32 %v973_v45, %v972_v44 }
 0x638   :  { %1535 = vtanh.f32 %v2010_v46 }
 0x642   :  { %v1536_v48 = vpop.eup %1535 }
 0x643   :  { %v978_v49 = vmul.f32 %v1536_v48, %v976_v47  ;;  %v1398_v48 = vld [vmem:[%s2085_s0 + $0x38] sm:$0xff] }
 0x645   :  { %v981_v50 = vpack.c.bf16 %v978_v49, %v978_v49 }
 0x647   :  { %1015 = vmatmul.mubr.bf16.vlgmr.msra.gmra.mrb[24].mxu0 %v981_v50  ;;  %1056 = vmatmul.mubr.bf16.vlgmr.msra.gmra.mrb[24].mxu1 %v981_v50 }
 0x648   :  { %1109 = vmatpush1.bf16.msra.mxu0 %v1549_v51  ;;  %1150 = vmatpush1.bf16.msra.mxu1 %v1550_v52 }
 0x649   :  { %1110 = vmatprep.subr.bf16.mxu0 %v1551_v53  ;;  %1151 = vmatprep.subr.bf16.mxu1 %v1552_v54 }
 0x64a   :  { %1140 = vmatprep.mubr.bf16.mxu0 %v1610_v0  ;;  %1181 = vmatprep.mubr.bf16.mxu1 %v1610_v0 }
 0x64c   :  { %1111 = vmatpush1.bf16.msra.mxu0 %v1553_v55  ;;  %1152 = vmatpush1.bf16.msra.mxu1 %v1554_v56 }
 0x64d   :  { %1112 = vmatprep.subr.bf16.mxu0 %v1555_v57  ;;  %1153 = vmatprep.subr.bf16.mxu1 %v1556_v58 }
 0x650   :  { %1113 = vmatpush1.bf16.msra.mxu0 %v1557_v59  ;;  %1154 = vmatpush1.bf16.msra.mxu1 %v1558_v33 }
 0x651   :  { %1114 = vmatprep.subr.bf16.mxu0 %v1686_v13  ;;  %1155 = vmatprep.subr.bf16.mxu1 %v1690_v14 }
 0x654   :  { %1115 = vmatpush1.bf16.msra.mxu0 %v1692_v15  ;;  %1156 = vmatpush1.bf16.msra.mxu1 %v1696_v16 }
 0x655   :  { %1116 = vmatprep.subr.bf16.mxu0 %v1698_v17  ;;  %1157 = vmatprep.subr.bf16.mxu1 %v1702_v18 }
 0x658   :  { %1117 = vmatpush1.bf16.msra.mxu0 %v1704_v19  ;;  %1158 = vmatpush1.bf16.msra.mxu1 %v1706_v20 }
 0x659   :  { %1118 = vmatprep.subr.bf16.mxu0 %v1710_v21  ;;  %1159 = vmatprep.subr.bf16.mxu1 %v1714_v22 }
 0x65c   :  { %1119 = vmatpush1.bf16.msra.mxu0 %v1716_v23  ;;  %1160 = vmatpush1.bf16.msra.mxu1 %v1720_v24  ;;  %v1397_v24 = vld [vmem:[%s2085_s0 + $0x30] sm:$0xff] }
 0x65d   :  { %1120 = vmatprep.subr.bf16.mxu0 %v1722_v25  ;;  %1161 = vmatprep.subr.bf16.mxu1 %v1726_v26 }
 0x660   :  { %1121 = vmatpush1.bf16.msra.mxu0 %v1728_v27  ;;  %1162 = vmatpush1.bf16.msra.mxu1 %v1730_v28 }
 0x661   :  { %1122 = vmatprep.subr.bf16.mxu0 %v1732_v29  ;;  %1163 = vmatprep.subr.bf16.mxu1 %v1734_v30 }
 0x664   :  { %1123 = vmatpush1.bf16.msra.mxu0 %v1742_v31  ;;  %1164 = vmatpush1.bf16.msra.mxu1 %v1744_v32 }
 0x665   :  { %1417 = vmatprep.subr.bf16.mxu0 %v1612_v9 }
 0x71a   :  { %v1016_v0 = vpop.f32.mrb[24].mxu0  ;;  %v1057_v13 = vpop.f32.mrb[24].mxu1 }
 0x71b   :  { %v1018_v14 = vpop.f32.mrb[25].mxu0  ;;  %v1059_v15 = vpop.f32.mrb[25].mxu1 }
 0x71c   :  { %v1068_v16 = vcombine.low %v1016_v0, %v1018_v14  ;;  %v1069_v17 = vcombine.low %v1057_v13, %v1059_v15  ;;  %v1020_v18 = vpop.f32.mrb[26].mxu0  ;;  %v1061_v19 = vpop.f32.mrb[26].mxu1  ;;  %v1399_v15 = vld [vmem:[%s2088_s3] ss:$0 sm:$0xff] }
 0x71d   :  { %v1021_v20 = vpop.f32.mrb[27].mxu0  ;;  %v1062_v21 = vpop.f32.mrb[27].mxu1 }
 0x71e   :  { %v1076_v22 = vrot.slane %v1068_v16, %v1788_v40  ;;  %v1083_v23 = vrot.slane %v1069_v17, %v1788_v40 }
 0x720   :  { %v1084_v25 = vcombine.low %v1076_v22, %v1083_v23 }
 0x722   :  { %v1086_v26 = vadd.f32 %v1397_v24, %v1084_v25 }
 0x724   :  { %v1087_v27 = vmul.f32 0.5, %v1086_v26  ;;  %v1092_v28 = vrot.slane %v1086_v26, 6 }
 0x726   :  { %1537 = vtanh.f32 %v1087_v27 }
 0x727   :  { %1539 = vtanh.f32 %v1092_v28 }
 0x730   :  { %v1538_v29 = vpop.eup %1537 }
 0x731   :  { %v1089_v30 = vmul.f32 0.5, %v1538_v29  ;;  %v1540_v34 = vpop.eup %1539 }
 0x733   :  { %v1090_v31 = vadd.f32 0.5, %v1089_v30 }
 0x735   :  { %v1096_v32 = vrot.slane %v1090_v31, 2  ;;  %v1099_v36 = vmul.f32 %v1540_v34, %v1090_v31  ;;  %v1102_v4 = vrot.slane %v1090_v31, 4 }
 0x737   :  { %v1098_v35 = vmul.f32 %v1096_v32, %v2010_v46 }
 0x739   :  { %v1100_v3 = vadd.f32 %v1099_v36, %v1098_v35 }
 0x73b   :  { %1541 = vtanh.f32 %v1100_v3 }
 0x745   :  { %v1542_v5 = vpop.eup %1541 }
 0x746   :  { %v1104_v6 = vmul.f32 %v1542_v5, %v1102_v4 }
 0x748   :  { %v1107_v7 = vpack.c.bf16 %v1104_v6, %v1104_v6 }
 0x74a   :  { %1141 = vmatmul.mubr.bf16.vlgmr.msra.gmra.mrb[28].mxu0 %v1107_v7  ;;  %1182 = vmatmul.mubr.bf16.vlgmr.msra.gmra.mrb[28].mxu1 %v1107_v7 }
 0x74b   :  { %1418 = vmatpush3.bf16.msra.mxu0 %v1493_v8  ;;  %1433 = vmatprep.mubr.msk.bf16.mxu0 %vm1613_vm0, %v1612_v9 }
 0x74c   :  { %1419 = vmatprep.subr.bf16.mxu0 %v1612_v9 }
 0x74f   :  { %1420 = vmatpush3.bf16.msra.mxu0 %v1494_v10 }
 0x750   :  { %1421 = vmatprep.subr.bf16.mxu0 %v1612_v9 }
 0x753   :  { %1422 = vmatpush3.bf16.msra.mxu0 %v1495_v11 }
 0x754   :  { %1423 = vmatprep.subr.bf16.mxu0 %v1612_v9 }
 0x757   :  { %1424 = vmatpush3.bf16.msra.mxu0 %v1496_v12 }
 0x758   :  { %1425 = vmatprep.subr.bf16.mxu0 %v1612_v9 }
 0x75b   :  { %1426 = vmatpush3.bf16.msra.mxu0 %v1497_v60 }
 0x75c   :  { %1427 = vmatprep.subr.bf16.mxu0 %v1612_v9 }
 0x75f   :  { %1428 = vmatpush3.bf16.msra.mxu0 %v1498_v61 }
 0x760   :  { %1429 = vmatprep.subr.bf16.mxu0 %v1612_v9 }
 0x763   :  { %1430 = vmatpush3.bf16.msra.mxu0 %v1499_v1 }
 0x764   :  { %1431 = vmatprep.subr.bf16.mxu0 %v1612_v9 }
 0x767   :  { %1432 = vmatpush3.bf16.msra.mxu0 %v1500_v62 }
 0x81d   :  { %v1142_v2 = vpop.f32.mrb[28].mxu0  ;;  %v1183_v63 = vpop.f32.mrb[28].mxu1 }
 0x81e   :  { %v1144_v37 = vpop.f32.mrb[29].mxu0  ;;  %v1185_v38 = vpop.f32.mrb[29].mxu1 }
 0x81f   :  { %v1194_v39 = vcombine.low %v1142_v2, %v1144_v37  ;;  %v1195_v41 = vcombine.low %v1183_v63, %v1185_v38  ;;  %v1146_v42 = vpop.f32.mrb[30].mxu0  ;;  %v1187_v43 = vpop.f32.mrb[30].mxu1 }
 0x820   :  { %v1147_v44 = vpop.f32.mrb[31].mxu0  ;;  %v1188_v45 = vpop.f32.mrb[31].mxu1 }
 0x821   :  { %v1202_v46 = vrot.slane %v1194_v39, %v1788_v40  ;;  %v1209_v47 = vrot.slane %v1195_v41, %v1788_v40 }
 0x823   :  { %v1210_v49 = vcombine.low %v1202_v46, %v1209_v47 }
 0x825   :  { %v1212_v50 = vadd.f32 %v1398_v48, %v1210_v49 }
 0x827   :  { %v1213_v51 = vmul.f32 0.5, %v1212_v50  ;;  %v1218_v52 = vrot.slane %v1212_v50, 6 }
 0x829   :  { %1543 = vtanh.f32 %v1213_v51 }
 0x82a   :  { %1545 = vtanh.f32 %v1218_v52 }
 0x833   :  { %v1544_v53 = vpop.eup %1543 }
 0x834   :  { %v1215_v54 = vmul.f32 0.5, %v1544_v53  ;;  %v1546_v57 = vpop.eup %1545 }
 0x836   :  { %v1216_v55 = vadd.f32 0.5, %v1215_v54 }
 0x838   :  { %v1222_v56 = vrot.slane %v1216_v55, 2  ;;  %v1225_v59 = vmul.f32 %v1546_v57, %v1216_v55  ;;  %v1228_v40 = vrot.slane %v1216_v55, 4 }
 0x83a   :  { %v1224_v58 = vmul.f32 %v1222_v56, %v1100_v3 }
 0x83c   :  { %v1226_v33 = vadd.f32 %v1225_v59, %v1224_v58 }
 0x83e   :  { %1547 = vtanh.f32 %v1226_v33 }
 0x848   :  { %v1548_v0 = vpop.eup %1547 }
 0x849   :  { %v1230_v13 = vmul.f32 %v1548_v0, %v1228_v40 }
 0x84b   :  { %v1231_v14 = vpack.c.bf16 %v1230_v13, %v1230_v13 }
 0x84d   :  { %1434 = vmatmul.mubr.bf16.vlgmr.msra.gmra.mrb[32].mxu0 %v1231_v14 }
 0x920   :  { %v1337_v16 = vpop.f32.mrb[32].mxu0 }
 0x921   :  { %v1338_v17 = vadd.f32 %v1399_v15, %v1337_v16  ;;  %v1435_v18 = vpop.f32.mrb[33].mxu0 }
 0x922   :  { %v1340_v19 = vpop.f32.mrb[34].mxu0 }
 0x923   :  { %v1436_v20 = vpop.f32.mrb[35].mxu0  ;;  %1344 = vst.msk [vmem:[#allocation5] sm:$0x3] %vm1343_vm1, %v1338_v17 }
 0x924   :  { %1592 = shalt.err (!%p1589_p12)
}
 0x925   :  { %s1593_s3 = scalar_lea.hbm %s2089_s4, 32 }
 0x926   :  { %p1594_p13 = scmp.ne.s32.totalorder %s2089_s4, %s1593_s3  ;;  %p1597_p0 = scmp.lt.u32.totalorder %s1593_s3, %s2089_s4 }
 0x928   :  { %p1599_p1 = pnand %p1597_p0, %p1594_p13 }
 0x92a   :  { %1602 = shalt.err (!%p1599_p1)
}
 0x92b   :  { %1354 = dma.vmem_to_hbm [thread:$0]  %s1352_s8, 32, %s2089_s4, [#allocation4]  }
 0x92c   :  { %1605 = dma.done.wait [#allocation4], 32  }
 0x92d   :  { %1606 = vsyncadd [#allocation4], 4294967264 }
 0x92e   :  { %1358 = vsyncpa [#allocation3], 1 }
 0x92f   :  { %1359 = vsyncpa [#allocation4], 1 }

</bundles_post_ra>
